<compile_context>
chip_gen: v5e
topology: v5e:2x2
jax: 0.10.0
libtpu: 0.0.40
codegen_flags: <defaults>
</compile_context>

<pallas_src>
import jax
import jax.numpy as jnp
from jax.experimental import pallas as pl
from jax.experimental.pallas import tpu as pltpu

EPS = 1e-5                      # nn.BatchNorm2d default
_IM2COL_MAX_CIN = 128           # below MXU contraction depth -> im2col;
                                # at/above it, accumulate per-tap matmuls
_VMEM_LIMIT = 48 * 1024 * 1024  # leaves headroom inside v7x's 64 MiB VMEM


def _cparams():
    return pltpu.CompilerParams(
        dimension_semantics=("parallel", "parallel"),
        vmem_limit_bytes=_VMEM_LIMIT,
    )


# --------------------------------------------------------------------------
# Wrapper-side phase split:  padded input -> (N*s*s, PH, PW, C)
#   xph[n*s*s + a*s + b, i, j, c] == pad(x)[n, i*s + a, j*s + b, c]
# For s == 1 this is exactly the zero-padded input (no data rearrangement).
# --------------------------------------------------------------------------
def _phase_split(x_nhwc, stride):
    N, H, W, C = x_nhwc.shape
    xp = jnp.pad(x_nhwc, ((0, 0), (1, 1), (1, 1), (0, 0)))
    Hp, Wp = H + 2, W + 2
    PH = -(-Hp // stride)
    PW = -(-Wp // stride)
    xp = jnp.pad(xp, ((0, 0), (0, PH * stride - Hp), (0, PW * stride - Wp), (0, 0)))
    xph = xp.reshape(N, PH, stride, PW, stride, C)
    xph = xph.transpose(0, 2, 4, 1, 3, 5)                  # (N, s, s, PH, PW, C)
    return xph.reshape(N * stride * stride, PH, PW, C)


# --------------------------------------------------------------------------
# Shared inner conv: 9 taps -> f32 accumulator.
#   narrow Cin : single im2col matmul (K = 9*Cin) to fill MXU contraction depth
#   wide  Cin : 9 accumulated matmuls (K = Cin); no patches concat, no 9x VMEM
# --------------------------------------------------------------------------
def _conv_taps_matmul(taps, w_ref, cin, cout):
    if cin < _IM2COL_MAX_CIN:
        patches = jnp.concatenate(taps, axis=1)            # (M, 9*cin)
        return jnp.dot(patches, w_ref[...], preferred_element_type=jnp.float32)
    acc = None
    for t, tap in enumerate(taps):
        part = jnp.dot(tap, w_ref[t * cin:(t + 1) * cin, :],
                       preferred_element_type=jnp.float32)
        acc = part if acc is None else acc + part
    return acc


# --------------------------------------------------------------------------
# Kernel A: strided 3x3 conv (row-tiled, halo rows as 1-row extra inputs)
#           + fused BN1 per-(n, row-tile) partial stats.
# --------------------------------------------------------------------------
def _make_conv1_kernel(stride, tr, hh, wo, cin, cout):
    s = stride

    def kernel(*refs):
        xm_ref = refs[0]                      # (ss, tr, PW, cin) main phase rows
        halo_refs = refs[1:1 + hh]            # hh x (ss, 1, PW, cin)
        w_ref = refs[1 + hh]                  # (9*cin, cout)
        y_ref, s_ref, q_ref = refs[2 + hh:5 + hh]

        taps = []
        for dy in range(3):
            for dx in range(3):
                p = (dy % s) * s + (dx % s)
                qy, qx = dy // s, dx // s
                segs = []
                main_hi = min(qy + tr, tr)
                if main_hi > qy:
                    segs.append(xm_ref[p, qy:main_hi, qx:qx + wo, :])
                for wr in range(max(qy, tr), qy + tr):
                    segs.append(halo_refs[wr - tr][p, 0:1, qx:qx + wo, :])
                tap = segs[0] if len(segs) == 1 else jnp.concatenate(segs, axis=0)
                taps.append(tap.reshape(tr * wo, cin))

        acc = _conv_taps_matmul(taps, w_ref, cin, cout)     # (tr*wo, cout) f32
        s_ref[0] = jnp.sum(acc, axis=0, keepdims=True)
        q_ref[0] = jnp.sum(acc * acc, axis=0, keepdims=True)
        y_ref[0] = acc.reshape(tr, wo, cout).astype(y_ref.dtype)

    return kernel


def _halo_map_a(tr, h):
    def m(n, r):
        return (n, tr * (r + 1) + h, 0, 0)
    return m


def _conv1_bn_stats(xph, w_hwio, stride, N, Ho, Wo, TR):
    Cin, Cout = w_hwio.shape[2], w_hwio.shape[3]
    ss = stride * stride
    PH, PW = xph.shape[1], xph.shape[2]
    hh = 2 // stride                       # extra rows below the tile needed by the taps
    T = Ho // TR
    wr = w_hwio.reshape(9 * Cin, Cout).astype(jnp.bfloat16)

    in_specs = [pl.BlockSpec((ss, TR, PW, Cin), lambda n, r: (n, r, 0, 0))]
    for h in range(hh):
        in_specs.append(pl.BlockSpec((ss, 1, PW, Cin), _halo_map_a(TR, h)))
    in_specs.append(pl.BlockSpec((9 * Cin, Cout), lambda n, r: (0, 0)))

    kern = _make_conv1_kernel(stride, TR, hh, Wo, Cin, Cout)
    return pl.pallas_call(
        kern,
        out_shape=(jax.ShapeDtypeStruct((N, Ho, Wo, Cout), jnp.bfloat16),
                   jax.ShapeDtypeStruct((N * T, 1, Cout), jnp.float32),
                   jax.ShapeDtypeStruct((N * T, 1, Cout), jnp.float32)),
        grid_spec=pltpu.PrefetchScalarGridSpec(
            num_scalar_prefetch=0,
            grid=(N, T),
            in_specs=in_specs,
            out_specs=(pl.BlockSpec((1, TR, Wo, Cout), lambda n, r: (n, r, 0, 0)),
                       pl.BlockSpec((1, 1, Cout), lambda n, r: (n * T + r, 0, 0)),
                       pl.BlockSpec((1, 1, Cout), lambda n, r: (n * T + r, 0, 0))),
        ),
        compiler_params=_cparams(),
    )(*((xph,) * (1 + hh) + (wr,)))


# --------------------------------------------------------------------------
# Kernel B: bn1-apply + ReLU (prologue) -> 3x3 conv (stride 1, row-tiled with
# 1-row halos) -> BN2 partial stats.  Zero padding of the activated map is
# built in a VMEM scratch (border stores + interior store), no concatenates.
# --------------------------------------------------------------------------
def _make_conv2_kernel(tr, wo, ch):
    def kernel(y1m_ref, y1a_ref, y1b_ref, sc_ref, sh_ref, w_ref,
               y2_ref, s_ref, q_ref, pad_ref):
        r = pl.program_id(1)
        nT = pl.num_programs(1)
        sc = sc_ref[...]
        sh = sh_ref[...]

        # left/right 1-px zero columns (covers the 4 corners too)
        zcol = jnp.zeros((tr + 2, 1, ch), jnp.bfloat16)
        pad_ref[:, 0:1, :] = zcol
        pad_ref[:, wo + 1:wo + 2, :] = zcol

        # bn1-apply + relu on the main tile -> scratch interior
        a_main = jnp.maximum(y1m_ref[0].astype(jnp.float32) * sc + sh, 0.0)
        pad_ref[1:tr + 1, 1:wo + 1, :] = a_main.astype(jnp.bfloat16)

        zrow = jnp.zeros((1, wo, ch), jnp.bfloat16)

        @pl.when(r > 0)
        def _():
            a = jnp.maximum(y1a_ref[0].astype(jnp.float32) * sc + sh, 0.0)
            pad_ref[0:1, 1:wo + 1, :] = a.astype(jnp.bfloat16)

        @pl.when(r == 0)
        def _():
            pad_ref[0:1, 1:wo + 1, :] = zrow

        @pl.when(r < nT - 1)
        def _():
            a = jnp.maximum(y1b_ref[0].astype(jnp.float32) * sc + sh, 0.0)
            pad_ref[tr + 1:tr + 2, 1:wo + 1, :] = a.astype(jnp.bfloat16)

        @pl.when(r == nT - 1)
        def _():
            pad_ref[tr + 1:tr + 2, 1:wo + 1, :] = zrow

        taps = [pad_ref[dy:dy + tr, dx:dx + wo, :].reshape(tr * wo, ch)
                for dy in range(3) for dx in range(3)]
        acc = _conv_taps_matmul(taps, w_ref, ch, ch)        # (tr*wo, ch) f32
        s_ref[0] = jnp.sum(acc, axis=0, keepdims=True)
        q_ref[0] = jnp.sum(acc * acc, axis=0, keepdims=True)
        y2_ref[0] = acc.reshape(tr, wo, ch).astype(y2_ref.dtype)

    return kernel


def _conv2_bnrelu_stats(y1, scale1, shift1, w_hwio, TR):
    N, Ho, Wo, C = y1.shape
    T = Ho // TR
    wr = w_hwio.reshape(9 * C, C).astype(jnp.bfloat16)
    kern = _make_conv2_kernel(TR, Wo, C)
    return pl.pallas_call(
        kern,
        out_shape=(jax.ShapeDtypeStruct((N, Ho, Wo, C), jnp.bfloat16),
                   jax.ShapeDtypeStruct((N * T, 1, C), jnp.float32),
                   jax.ShapeDtypeStruct((N * T, 1, C), jnp.float32)),
        grid_spec=pltpu.PrefetchScalarGridSpec(
            num_scalar_prefetch=0,
            grid=(N, T),
            in_specs=[
                pl.BlockSpec((1, TR, Wo, C), lambda n, r: (n, r, 0, 0)),
                pl.BlockSpec((1, 1, Wo, C),
                             lambda n, r: (n, jnp.maximum(r * TR - 1, 0), 0, 0)),
                pl.BlockSpec((1, 1, Wo, C),
                             lambda n, r: (n, jnp.minimum(r * TR + TR, Ho - 1), 0, 0)),
                pl.BlockSpec((1, C), lambda n, r: (0, 0)),
                pl.BlockSpec((1, C), lambda n, r: (0, 0)),
                pl.BlockSpec((9 * C, C), lambda n, r: (0, 0)),
            ],
            out_specs=(pl.BlockSpec((1, TR, Wo, C), lambda n, r: (n, r, 0, 0)),
                       pl.BlockSpec((1, 1, C), lambda n, r: (n * T + r, 0, 0)),
                       pl.BlockSpec((1, 1, C), lambda n, r: (n * T + r, 0, 0))),
            scratch_shapes=[pltpu.VMEM((TR + 2, Wo + 2, C), jnp.bfloat16)],
        ),
        compiler_params=_cparams(),
    )(y1, y1, y1, scale1, shift1, wr)


# --------------------------------------------------------------------------
# Kernel C: shortcut + bn2-apply + residual add + ReLU, fused and row-tiled.
# --------------------------------------------------------------------------
def _bn_add_relu_kernel(y2_ref, x_ref, sc_ref, sh_ref, o_ref):
    out = (y2_ref[0].astype(jnp.float32) * sc_ref[...] + sh_ref[...]
           + x_ref[0].astype(jnp.float32))
    o_ref[0] = jnp.maximum(out, 0.0).astype(o_ref.dtype)


def _identity_bn_add_relu(y2, x_bf16, scale2, shift2, TR):
    N, Ho, Wo, C = y2.shape
    T = Ho // TR
    return pl.pallas_call(
        _bn_add_relu_kernel,
        out_shape=jax.ShapeDtypeStruct((N, Ho, Wo, C), jnp.float32),
        grid_spec=pltpu.PrefetchScalarGridSpec(
            num_scalar_prefetch=0,
            grid=(N, T),
            in_specs=[
                pl.BlockSpec((1, TR, Wo, C), lambda n, r: (n, r, 0, 0)),
                pl.BlockSpec((1, TR, Wo, C), lambda n, r: (n, r, 0, 0)),
                pl.BlockSpec((1, C), lambda n, r: (0, 0)),
                pl.BlockSpec((1, C), lambda n, r: (0, 0)),
            ],
            out_specs=pl.BlockSpec((1, TR, Wo, C), lambda n, r: (n, r, 0, 0)),
        ),
        compiler_params=_cparams(),
    )(y2, x_bf16, scale2, shift2)


def _make_proj_kernel(tr, wo, cin, cout):
    def kernel(y2_ref, xs_ref, w_ref, b_ref, sc_ref, sh_ref, o_ref):
        xs = xs_ref[0, :, 0:wo, :].reshape(tr * wo, cin)
        proj = jnp.dot(xs, w_ref[...], preferred_element_type=jnp.float32) + b_ref[...]
        proj = proj.reshape(tr, wo, cout)
        out = y2_ref[0].astype(jnp.float32) * sc_ref[...] + sh_ref[...] + proj
        o_ref[0] = jnp.maximum(out, 0.0).astype(o_ref.dtype)
    return kernel


def _proj_bn_add_relu(y2, x_bf16, xph, w3, b3, scale2, shift2, stride, TR):
    N, Ho, Wo, Cout = y2.shape
    Cin = w3.shape[0]
    T = Ho // TR
    if stride == 1:
        xsrc = x_bf16                       # (N, H, W, Cin), H == Ho, W == Wo
        srcW = x_bf16.shape[2]
        src_map = lambda n, r: (n, r, 0, 0)
    else:
        ss = stride * stride
        phase = stride + 1                  # phase holding x[:, ::s, ::s] at offset 0
        xsrc = xph                          # (N*ss, PH, PW, Cin)
        srcW = xph.shape[2]
        src_map = lambda n, r: (n * ss + phase, r, 0, 0)
    kern = _make_proj_kernel(TR, Wo, Cin, Cout)
    return pl.pallas_call(
        kern,
        out_shape=jax.ShapeDtypeStruct((N, Ho, Wo, Cout), jnp.float32),
        grid_spec=pltpu.PrefetchScalarGridSpec(
            num_scalar_prefetch=0,
            grid=(N, T),
            in_specs=[
                pl.BlockSpec((1, TR, Wo, Cout), lambda n, r: (n, r, 0, 0)),
                pl.BlockSpec((1, TR, srcW, Cin), src_map),
                pl.BlockSpec((Cin, Cout), lambda n, r: (0, 0)),
                pl.BlockSpec((1, Cout), lambda n, r: (0, 0)),
                pl.BlockSpec((1, Cout), lambda n, r: (0, 0)),
                pl.BlockSpec((1, Cout), lambda n, r: (0, 0)),
            ],
            out_specs=pl.BlockSpec((1, TR, Wo, Cout), lambda n, r: (n, r, 0, 0)),
        ),
        compiler_params=_cparams(),
    )(y2, xsrc, w3.astype(jnp.bfloat16), b3.reshape(1, Cout), scale2, shift2)


# --------------------------------------------------------------------------
# BN glue: fold per-(batch, row-tile) partial (sum, sumsq) into scale/shift.
# NOTE: one-pass E[y^2]-E[y]^2 in f32; adequate here (conv outputs are near
# zero-mean); a centered/two-pass scheme would be more robust for real ckpts.
# --------------------------------------------------------------------------
def _bn_fold(ssum, sqsum, gamma, beta, count):
    mean = jnp.sum(ssum, axis=(0, 1)) / count
    var = jnp.sum(sqsum, axis=(0, 1)) / count - mean * mean   # biased (PyTorch train)
    scale = gamma * jax.lax.rsqrt(var + EPS)
    shift = beta - mean * scale
    return scale[None, :], shift[None, :]                     # each (1, C), f32


def _pick_row_tile(Ho, Wo):
    # Target ~256-1024 matmul M rows (TR * Wo) while evenly dividing Ho.
    target = max(1, 1024 // max(Wo, 1))
    tr = 1
    for d in range(1, Ho + 1):
        if Ho % d == 0 and d <= target:
            tr = d
    return tr


# --------------------------------------------------------------------------
# Residual block forward (NCHW in / NCHW out, like the PyTorch module).
# conv1/conv2 biases are dropped: with training-mode BN the per-channel bias
# cancels exactly against the batch-mean subtraction.
# --------------------------------------------------------------------------
def residual_forward(x_nchw, params, use_1x1conv=False, stride=1, row_tile=None):
    x = jnp.transpose(x_nchw, (0, 2, 3, 1)).astype(jnp.float32)   # NCHW -> NHWC
    N, H, W, Cin = x.shape
    Ho = (H - 1) // stride + 1
    Wo = (W - 1) // stride + 1

    x_bf = x.astype(jnp.bfloat16)
    xph = _phase_split(x_bf, stride)                  # (N*s*s, PH, PW, Cin)

    TR = _pick_row_tile(Ho, Wo) if row_tile is None else row_tile
    assert Ho % TR == 0, "row_tile must evenly divide the output height"

    # conv1 (strided, row-tiled, fused BN1 partial stats)
    y1, s1, q1 = _conv1_bn_stats(xph, params["w1"], stride, N, Ho, Wo, TR)
    sc1, sh1 = _bn_fold(s1, q1, params["gamma1"], params["beta1"], N * Ho * Wo)

    # bn1-apply + relu fused into conv2 prologue; conv2 + BN2 partial stats
    y2, s2, q2 = _conv2_bnrelu_stats(y1, sc1, sh1, params["w2"], TR)
    sc2, sh2 = _bn_fold(s2, q2, params["gamma2"], params["beta2"], N * Ho * Wo)

    # shortcut + bn2-apply + add + relu (single fused kernel)
    if use_1x1conv:
        out = _proj_bn_add_relu(y2, x_bf, xph, params["w3"], params["b3"],
                                sc2, sh2, stride, TR)
    else:
        out = _identity_bn_add_relu(y2, x_bf, sc2, sh2, TR)

    return jnp.transpose(out, (0, 3, 1, 2))                       # NHWC -> NCHW


# --------------------------------------------------------------------------
# Pure-JAX reference (sanity check) and deterministic parameter init.
# The reference keeps the conv biases; they cancel in training-mode BN, which
# also validates the bias-drop optimization.
# --------------------------------------------------------------------------
def residual_reference(x_nchw, params, use_1x1conv=False, stride=1):
    x = jnp.transpose(x_nchw, (0, 2, 3, 1))
    dn = ("NHWC", "HWIO", "NHWC")

    def conv(xx, w, b, s, pad):
        y = jax.lax.conv_general_dilated(xx, w, (s, s), pad, dimension_numbers=dn)
        return y + b[None, None, None, :]

    def bn(y, g, bt):
        m = jnp.mean(y, axis=(0, 1, 2))
        v = jnp.mean(jnp.square(y - m), axis=(0, 1, 2))
        return (y - m) * jax.lax.rsqrt(v + EPS) * g + bt

    y = jax.nn.relu(bn(conv(x, params["w1"], params["b1"], stride, ((1, 1), (1, 1))),
                       params["gamma1"], params["beta1"]))
    y = bn(conv(y, params["w2"], params["b2"], 1, ((1, 1), (1, 1))),
           params["gamma2"], params["beta2"])
    if use_1x1conv:
        w3 = params["w3"].reshape(1, 1, *params["w3"].shape)
        sc = conv(x, w3, params["b3"], stride, ((0, 0), (0, 0)))
    else:
        sc = x
    return jnp.transpose(jax.nn.relu(y + sc), (0, 3, 1, 2))


def init_params(key, in_ch, out_ch, use_1x1conv):
    ks = jax.random.split(key, 6)
    p = {
        "w1": 0.1 * jax.random.normal(ks[0], (3, 3, in_ch, out_ch), jnp.float32),
        "b1": 0.1 * jax.random.normal(ks[1], (out_ch,), jnp.float32),
        "w2": 0.1 * jax.random.normal(ks[2], (3, 3, out_ch, out_ch), jnp.float32),
        "b2": 0.1 * jax.random.normal(ks[3], (out_ch,), jnp.float32),
        "gamma1": jnp.ones((out_ch,), jnp.float32),   # nn.BatchNorm2d init
        "beta1": jnp.zeros((out_ch,), jnp.float32),
        "gamma2": jnp.ones((out_ch,), jnp.float32),
        "beta2": jnp.zeros((out_ch,), jnp.float32),
    }
    if use_1x1conv:
        p["w3"] = 0.1 * jax.random.normal(ks[4], (in_ch, out_ch), jnp.float32)
        p["b3"] = 0.1 * jax.random.normal(ks[5], (out_ch,), jnp.float32)
    return p


if __name__ == "__main__":
    key = jax.random.PRNGKey(0)
    kx, kp1, kp2 = jax.random.split(key, 3)

    N, C, H, W = 2, 4, 16, 16
    x = jax.random.normal(kx, (N, C, H, W), jnp.float32)

    # Case 1: identity shortcut (in == out channels, stride=1); row_tile=8 -> 2
    # row tiles per image so the halo / boundary logic is actually exercised.
    params1 = init_params(kp1, C, C, use_1x1conv=False)
    out1 = residual_forward(x, params1, use_1x1conv=False, stride=1, row_tile=8)
    jax.block_until_ready(out1)
    ref1 = residual_reference(x, params1, use_1x1conv=False, stride=1)
    assert out1.shape == (N, C, H, W)
    assert jnp.allclose(out1, ref1, atol=5e-2, rtol=5e-2), \
        float(jnp.max(jnp.abs(out1 - ref1)))

    # Case 2: 1x1-conv shortcut, stride=2, channel change 4 -> 8; row_tile=4 ->
    # 2 row tiles of the 8x8 output.
    out_ch = 8
    params2 = init_params(kp2, C, out_ch, use_1x1conv=True)
    out2 = residual_forward(x, params2, use_1x1conv=True, stride=2, row_tile=4)
    jax.block_until_ready(out2)
    ref2 = residual_reference(x, params2, use_1x1conv=True, stride=2)
    assert out2.shape == (N, out_ch, H // 2, W // 2)
    assert jnp.allclose(out2, ref2, atol=5e-2, rtol=5e-2), \
        float(jnp.max(jnp.abs(out2 - ref2)))

    print("KERNEL_OK")
</pallas_src>

<mosaic_0001>
module attributes {stable_mosaic.version = 11 : i64} {
  func.func @kernel(%arg0: i32, %arg1: i32, %arg2: memref<1x8x18x4xbf16, #tpu.memory_space<vmem>>, %arg3: memref<1x1x18x4xbf16, #tpu.memory_space<vmem>>, %arg4: memref<1x1x18x4xbf16, #tpu.memory_space<vmem>>, %arg5: memref<36x4xbf16, #tpu.memory_space<vmem>>, %arg6: memref<1x8x16x4xbf16, #tpu.memory_space<vmem>>, %arg7: memref<1x1x4xf32, #tpu.memory_space<vmem>>, %arg8: memref<1x1x4xf32, #tpu.memory_space<vmem>>) attributes {dimension_semantics = [#tpu.dimension_semantics<parallel>, #tpu.dimension_semantics<parallel>], iteration_bounds = array<i64: 2, 2>, scalar_prefetch = 0 : i64, scratch_operands = 0 : i64, tpu.core_type = #tpu.core_type<tc>, window_params = [{transform_indices = @transform_0, window_bounds = array<i64: 1, 8, 18, 4>}, {transform_indices = @transform_1, window_bounds = array<i64: 1, 1, 18, 4>}, {transform_indices = @transform_2, window_bounds = array<i64: 1, 1, 18, 4>}, {pipeline_mode = #tpu.pipeline_mode<synchronous>, transform_indices = @transform_3, window_bounds = array<i64: 36, 4>}, {transform_indices = @transform_4, window_bounds = array<i64: 1, 8, 16, 4>}, {transform_indices = @transform_5, window_bounds = array<i64: 1, 1, 4>}, {transform_indices = @transform_6, window_bounds = array<i64: 1, 1, 4>}]} {
    %c0 = arith.constant 0 : index
    %c0_0 = arith.constant 0 : index
    %c0_1 = arith.constant 0 : index
    %c0_2 = arith.constant 0 : index
    %0 = vector.load %arg2[%c0, %c0_0, %c0_1, %c0_2] : memref<1x8x18x4xbf16, #tpu.memory_space<vmem>>, vector<1x8x16x4xbf16>
    %1 = vector.shape_cast %0 : vector<1x8x16x4xbf16> to vector<8x16x4xbf16>
    %2 = vector.shape_cast %1 : vector<8x16x4xbf16> to vector<128x4xbf16>
    %c0_3 = arith.constant 0 : index
    %c0_4 = arith.constant 0 : index
    %c1 = arith.constant 1 : index
    %c0_5 = arith.constant 0 : index
    %3 = vector.load %arg2[%c0_3, %c0_4, %c1, %c0_5] : memref<1x8x18x4xbf16, #tpu.memory_space<vmem>>, vector<1x8x16x4xbf16>
    %4 = vector.shape_cast %3 : vector<1x8x16x4xbf16> to vector<8x16x4xbf16>
    %5 = vector.shape_cast %4 : vector<8x16x4xbf16> to vector<128x4xbf16>
    %c0_6 = arith.constant 0 : index
    %c0_7 = arith.constant 0 : index
    %c2 = arith.constant 2 : index
    %c0_8 = arith.constant 0 : index
    %6 = vector.load %arg2[%c0_6, %c0_7, %c2, %c0_8] : memref<1x8x18x4xbf16, #tpu.memory_space<vmem>>, vector<1x8x16x4xbf16>
    %7 = vector.shape_cast %6 : vector<1x8x16x4xbf16> to vector<8x16x4xbf16>
    %8 = vector.shape_cast %7 : vector<8x16x4xbf16> to vector<128x4xbf16>
    %c0_9 = arith.constant 0 : index
    %c1_10 = arith.constant 1 : index
    %c0_11 = arith.constant 0 : index
    %c0_12 = arith.constant 0 : index
    %9 = vector.load %arg2[%c0_9, %c1_10, %c0_11, %c0_12] : memref<1x8x18x4xbf16, #tpu.memory_space<vmem>>, vector<1x7x16x4xbf16>
    %10 = vector.shape_cast %9 : vector<1x7x16x4xbf16> to vector<7x16x4xbf16>
    %c0_13 = arith.constant 0 : index
    %c0_14 = arith.constant 0 : index
    %c0_15 = arith.constant 0 : index
    %c0_16 = arith.constant 0 : index
    %11 = vector.load %arg3[%c0_13, %c0_14, %c0_15, %c0_16] : memref<1x1x18x4xbf16, #tpu.memory_space<vmem>>, vector<1x1x16x4xbf16>
    %12 = vector.shape_cast %11 : vector<1x1x16x4xbf16> to vector<1x16x4xbf16>
    %13 = tpu.concatenate %10, %12 in 0 : vector<7x16x4xbf16>, vector<1x16x4xbf16> -> vector<8x16x4xbf16>
    %14 = vector.shape_cast %13 : vector<8x16x4xbf16> to vector<128x4xbf16>
    %c0_17 = arith.constant 0 : index
    %c1_18 = arith.constant 1 : index
    %c1_19 = arith.constant 1 : index
    %c0_20 = arith.constant 0 : index
    %15 = vector.load %arg2[%c0_17, %c1_18, %c1_19, %c0_20] : memref<1x8x18x4xbf16, #tpu.memory_space<vmem>>, vector<1x7x16x4xbf16>
    %16 = vector.shape_cast %15 : vector<1x7x16x4xbf16> to vector<7x16x4xbf16>
    %c0_21 = arith.constant 0 : index
    %c0_22 = arith.constant 0 : index
    %c1_23 = arith.constant 1 : index
    %c0_24 = arith.constant 0 : index
    %17 = vector.load %arg3[%c0_21, %c0_22, %c1_23, %c0_24] : memref<1x1x18x4xbf16, #tpu.memory_space<vmem>>, vector<1x1x16x4xbf16>
    %18 = vector.shape_cast %17 : vector<1x1x16x4xbf16> to vector<1x16x4xbf16>
    %19 = tpu.concatenate %16, %18 in 0 : vector<7x16x4xbf16>, vector<1x16x4xbf16> -> vector<8x16x4xbf16>
    %20 = vector.shape_cast %19 : vector<8x16x4xbf16> to vector<128x4xbf16>
    %c0_25 = arith.constant 0 : index
    %c1_26 = arith.constant 1 : index
    %c2_27 = arith.constant 2 : index
    %c0_28 = arith.constant 0 : index
    %21 = vector.load %arg2[%c0_25, %c1_26, %c2_27, %c0_28] : memref<1x8x18x4xbf16, #tpu.memory_space<vmem>>, vector<1x7x16x4xbf16>
    %22 = vector.shape_cast %21 : vector<1x7x16x4xbf16> to vector<7x16x4xbf16>
    %c0_29 = arith.constant 0 : index
    %c0_30 = arith.constant 0 : index
    %c2_31 = arith.constant 2 : index
    %c0_32 = arith.constant 0 : index
    %23 = vector.load %arg3[%c0_29, %c0_30, %c2_31, %c0_32] : memref<1x1x18x4xbf16, #tpu.memory_space<vmem>>, vector<1x1x16x4xbf16>
    %24 = vector.shape_cast %23 : vector<1x1x16x4xbf16> to vector<1x16x4xbf16>
    %25 = tpu.concatenate %22, %24 in 0 : vector<7x16x4xbf16>, vector<1x16x4xbf16> -> vector<8x16x4xbf16>
    %26 = vector.shape_cast %25 : vector<8x16x4xbf16> to vector<128x4xbf16>
    %c0_33 = arith.constant 0 : index
    %c2_34 = arith.constant 2 : index
    %c0_35 = arith.constant 0 : index
    %c0_36 = arith.constant 0 : index
    %27 = vector.load %arg2[%c0_33, %c2_34, %c0_35, %c0_36] : memref<1x8x18x4xbf16, #tpu.memory_space<vmem>>, vector<1x6x16x4xbf16>
    %28 = vector.shape_cast %27 : vector<1x6x16x4xbf16> to vector<6x16x4xbf16>
    %c0_37 = arith.constant 0 : index
    %c0_38 = arith.constant 0 : index
    %c0_39 = arith.constant 0 : index
    %c0_40 = arith.constant 0 : index
    %29 = vector.load %arg3[%c0_37, %c0_38, %c0_39, %c0_40] : memref<1x1x18x4xbf16, #tpu.memory_space<vmem>>, vector<1x1x16x4xbf16>
    %30 = vector.shape_cast %29 : vector<1x1x16x4xbf16> to vector<1x16x4xbf16>
    %c0_41 = arith.constant 0 : index
    %c0_42 = arith.constant 0 : index
    %c0_43 = arith.constant 0 : index
    %c0_44 = arith.constant 0 : index
    %31 = vector.load %arg4[%c0_41, %c0_42, %c0_43, %c0_44] : memref<1x1x18x4xbf16, #tpu.memory_space<vmem>>, vector<1x1x16x4xbf16>
    %32 = vector.shape_cast %31 : vector<1x1x16x4xbf16> to vector<1x16x4xbf16>
    %33 = tpu.concatenate %28, %30, %32 in 0 : vector<6x16x4xbf16>, vector<1x16x4xbf16>, vector<1x16x4xbf16> -> vector<8x16x4xbf16>
    %34 = vector.shape_cast %33 : vector<8x16x4xbf16> to vector<128x4xbf16>
    %c0_45 = arith.constant 0 : index
    %c2_46 = arith.constant 2 : index
    %c1_47 = arith.constant 1 : index
    %c0_48 = arith.constant 0 : index
    %35 = vector.load %arg2[%c0_45, %c2_46, %c1_47, %c0_48] : memref<1x8x18x4xbf16, #tpu.memory_space<vmem>>, vector<1x6x16x4xbf16>
    %36 = vector.shape_cast %35 : vector<1x6x16x4xbf16> to vector<6x16x4xbf16>
    %c0_49 = arith.constant 0 : index
    %c0_50 = arith.constant 0 : index
    %c1_51 = arith.constant 1 : index
    %c0_52 = arith.constant 0 : index
    %37 = vector.load %arg3[%c0_49, %c0_50, %c1_51, %c0_52] : memref<1x1x18x4xbf16, #tpu.memory_space<vmem>>, vector<1x1x16x4xbf16>
    %38 = vector.shape_cast %37 : vector<1x1x16x4xbf16> to vector<1x16x4xbf16>
    %c0_53 = arith.constant 0 : index
    %c0_54 = arith.constant 0 : index
    %c1_55 = arith.constant 1 : index
    %c0_56 = arith.constant 0 : index
    %39 = vector.load %arg4[%c0_53, %c0_54, %c1_55, %c0_56] : memref<1x1x18x4xbf16, #tpu.memory_space<vmem>>, vector<1x1x16x4xbf16>
    %40 = vector.shape_cast %39 : vector<1x1x16x4xbf16> to vector<1x16x4xbf16>
    %41 = tpu.concatenate %36, %38, %40 in 0 : vector<6x16x4xbf16>, vector<1x16x4xbf16>, vector<1x16x4xbf16> -> vector<8x16x4xbf16>
    %42 = vector.shape_cast %41 : vector<8x16x4xbf16> to vector<128x4xbf16>
    %c0_57 = arith.constant 0 : index
    %c2_58 = arith.constant 2 : index
    %c2_59 = arith.constant 2 : index
    %c0_60 = arith.constant 0 : index
    %43 = vector.load %arg2[%c0_57, %c2_58, %c2_59, %c0_60] : memref<1x8x18x4xbf16, #tpu.memory_space<vmem>>, vector<1x6x16x4xbf16>
    %44 = vector.shape_cast %43 : vector<1x6x16x4xbf16> to vector<6x16x4xbf16>
    %c0_61 = arith.constant 0 : index
    %c0_62 = arith.constant 0 : index
    %c2_63 = arith.constant 2 : index
    %c0_64 = arith.constant 0 : index
    %45 = vector.load %arg3[%c0_61, %c0_62, %c2_63, %c0_64] : memref<1x1x18x4xbf16, #tpu.memory_space<vmem>>, vector<1x1x16x4xbf16>
    %46 = vector.shape_cast %45 : vector<1x1x16x4xbf16> to vector<1x16x4xbf16>
    %c0_65 = arith.constant 0 : index
    %c0_66 = arith.constant 0 : index
    %c2_67 = arith.constant 2 : index
    %c0_68 = arith.constant 0 : index
    %47 = vector.load %arg4[%c0_65, %c0_66, %c2_67, %c0_68] : memref<1x1x18x4xbf16, #tpu.memory_space<vmem>>, vector<1x1x16x4xbf16>
    %48 = vector.shape_cast %47 : vector<1x1x16x4xbf16> to vector<1x16x4xbf16>
    %49 = tpu.concatenate %44, %46, %48 in 0 : vector<6x16x4xbf16>, vector<1x16x4xbf16>, vector<1x16x4xbf16> -> vector<8x16x4xbf16>
    %50 = vector.shape_cast %49 : vector<8x16x4xbf16> to vector<128x4xbf16>
    %51 = tpu.concatenate %2, %5, %8, %14, %20, %26, %34, %42, %50 in 1 : vector<128x4xbf16>, vector<128x4xbf16>, vector<128x4xbf16>, vector<128x4xbf16>, vector<128x4xbf16>, vector<128x4xbf16>, vector<128x4xbf16>, vector<128x4xbf16>, vector<128x4xbf16> -> vector<128x36xbf16>
    %c0_69 = arith.constant 0 : index
    %c0_70 = arith.constant 0 : index
    %52 = vector.load %arg5[%c0_69, %c0_70] : memref<36x4xbf16, #tpu.memory_space<vmem>>, vector<36x4xbf16>
    %cst = arith.constant dense<0.000000e+00> : vector<128x4xf32>
    %53 = tpu.matmul %51, %52, %cst {dimension_numbers = #tpu.dot_dimension_numbers<[1], [0], [0], [1], [0, 0, 1, 1], [], []>} : vector<128x36xbf16>, vector<36x4xbf16>, vector<128x4xf32> -> vector<128x4xf32>
    %cst_71 = arith.constant dense<0.000000e+00> : vector<4xf32>
    %54 = vector.multi_reduction <add>, %53, %cst_71 [0] : vector<128x4xf32> to vector<4xf32>
    %55 = vector.shape_cast %54 : vector<4xf32> to vector<1x4xf32>
    %c0_72 = arith.constant 0 : index
    %c0_73 = arith.constant 0 : index
    %c0_74 = arith.constant 0 : index
    %56 = vector.load %arg7[%c0_72, %c0_73, %c0_74] : memref<1x1x4xf32, #tpu.memory_space<vmem>>, vector<1x1x4xf32>
    %57 = vector.shape_cast %56 : vector<1x1x4xf32> to vector<1x4xf32>
    %58 = vector.shape_cast %55 : vector<1x4xf32> to vector<1x1x4xf32>
    tpu.vector_store %arg7[%c0_72, %c0_73, %c0_74], %58 {strides = array<i32>} : memref<1x1x4xf32, #tpu.memory_space<vmem>>, vector<1x1x4xf32>,
    %59 = arith.mulf %53, %53 : vector<128x4xf32>
    %cst_75 = arith.constant dense<0.000000e+00> : vector<4xf32>
    %60 = vector.multi_reduction <add>, %59, %cst_75 [0] : vector<128x4xf32> to vector<4xf32>
    %61 = vector.shape_cast %60 : vector<4xf32> to vector<1x4xf32>
    %c0_76 = arith.constant 0 : index
    %c0_77 = arith.constant 0 : index
    %c0_78 = arith.constant 0 : index
    %62 = vector.load %arg8[%c0_76, %c0_77, %c0_78] : memref<1x1x4xf32, #tpu.memory_space<vmem>>, vector<1x1x4xf32>
    %63 = vector.shape_cast %62 : vector<1x1x4xf32> to vector<1x4xf32>
    %64 = vector.shape_cast %61 : vector<1x4xf32> to vector<1x1x4xf32>
    tpu.vector_store %arg8[%c0_76, %c0_77, %c0_78], %64 {strides = array<i32>} : memref<1x1x4xf32, #tpu.memory_space<vmem>>, vector<1x1x4xf32>,
    %65 = vector.shape_cast %53 : vector<128x4xf32> to vector<8x16x4xf32>
    %66 = arith.truncf %65 : vector<8x16x4xf32> to vector<8x16x4xbf16>
    %c0_79 = arith.constant 0 : index
    %c0_80 = arith.constant 0 : index
    %c0_81 = arith.constant 0 : index
    %c0_82 = arith.constant 0 : index
    %67 = vector.load %arg6[%c0_79, %c0_80, %c0_81, %c0_82] : memref<1x8x16x4xbf16, #tpu.memory_space<vmem>>, vector<1x8x16x4xbf16>
    %68 = vector.shape_cast %67 : vector<1x8x16x4xbf16> to vector<8x16x4xbf16>
    %69 = vector.shape_cast %66 : vector<8x16x4xbf16> to vector<1x8x16x4xbf16>
    tpu.vector_store %arg6[%c0_79, %c0_80, %c0_81, %c0_82], %69 {strides = array<i32>} : memref<1x8x16x4xbf16, #tpu.memory_space<vmem>>, vector<1x8x16x4xbf16>,
    return
  }
  func.func @transform_0(%arg0: i32, %arg1: i32) -> (i32, i32, i32, i32) {
    %c0_i32 = arith.constant 0 : i32
    %c0_i32_0 = arith.constant 0 : i32
    %c0_i32_1 = arith.constant 0 : i32
    return %arg0, %arg1, %c0_i32, %c0_i32_0 : i32, i32, i32, i32
  }
  func.func @transform_1(%arg0: i32, %arg1: i32) -> (i32, i32, i32, i32) {
    %c1_i32 = arith.constant 1 : i32
    %0 = arith.addi %arg1, %c1_i32 : i32
    %c8_i32 = arith.constant 8 : i32
    %1 = arith.muli %c8_i32, %0 : i32
    %c0_i32 = arith.constant 0 : i32
    %2 = arith.addi %1, %c0_i32 : i32
    %c0_i32_0 = arith.constant 0 : i32
    %c0_i32_1 = arith.constant 0 : i32
    %c0_i32_2 = arith.constant 0 : i32
    return %arg0, %2, %c0_i32_0, %c0_i32_1 : i32, i32, i32, i32
  }
  func.func @transform_2(%arg0: i32, %arg1: i32) -> (i32, i32, i32, i32) {
    %c1_i32 = arith.constant 1 : i32
    %0 = arith.addi %arg1, %c1_i32 : i32
    %c8_i32 = arith.constant 8 : i32
    %1 = arith.muli %c8_i32, %0 : i32
    %c1_i32_0 = arith.constant 1 : i32
    %2 = arith.addi %1, %c1_i32_0 : i32
    %c0_i32 = arith.constant 0 : i32
    %c0_i32_1 = arith.constant 0 : i32
    %c0_i32_2 = arith.constant 0 : i32
    return %arg0, %2, %c0_i32, %c0_i32_1 : i32, i32, i32, i32
  }
  func.func @transform_3(%arg0: i32, %arg1: i32) -> (i32, i32) {
    %c0_i32 = arith.constant 0 : i32
    %c0_i32_0 = arith.constant 0 : i32
    %c0_i32_1 = arith.constant 0 : i32
    return %c0_i32, %c0_i32_0 : i32, i32
  }
  func.func @transform_4(%arg0: i32, %arg1: i32) -> (i32, i32, i32, i32) {
    %c0_i32 = arith.constant 0 : i32
    %c0_i32_0 = arith.constant 0 : i32
    %c0_i32_1 = arith.constant 0 : i32
    return %arg0, %arg1, %c0_i32, %c0_i32_0 : i32, i32, i32, i32
  }
  func.func @transform_5(%arg0: i32, %arg1: i32) -> (i32, i32, i32) {
    %c2_i32 = arith.constant 2 : i32
    %0 = arith.muli %arg0, %c2_i32 : i32
    %1 = arith.addi %0, %arg1 : i32
    %c0_i32 = arith.constant 0 : i32
    %c0_i32_0 = arith.constant 0 : i32
    %c0_i32_1 = arith.constant 0 : i32
    return %1, %c0_i32, %c0_i32_0 : i32, i32, i32
  }
  func.func @transform_6(%arg0: i32, %arg1: i32) -> (i32, i32, i32) {
    %c2_i32 = arith.constant 2 : i32
    %0 = arith.muli %arg0, %c2_i32 : i32
    %1 = arith.addi %0, %arg1 : i32
    %c0_i32 = arith.constant 0 : i32
    %c0_i32_0 = arith.constant 0 : i32
    %c0_i32_1 = arith.constant 0 : i32
    return %1, %c0_i32, %c0_i32_0 : i32, i32, i32
  }
}

</mosaic_0001>

<bundles_post_ra>
// kernel: tpu_custom_call.1
= control target key start
LH: loop header
LB: loop body
LE: loop exit
PB: predicated region body
PF: predicated region fallthrough
CT: control target
= control target key end

     0   :  { %s3825_s0 = inlined_call_operand.vmem [shape: bf16[2,18,18,4], index: 0, kind: input, shape index: {}]   ;;  %s3826_s1 = inlined_call_operand.vmem [shape: bf16[2,18,18,4], index: 1, kind: input, shape index: {}]   ;;  %s3827_s2 = inlined_call_operand.vmem [shape: bf16[2,18,18,4], index: 2, kind: input, shape index: {}]   ;;  %s3828_s3 = inlined_call_operand.vmem [shape: bf16[36,4], index: 3, kind: input, shape index: {}]   ;;  %s3829_s4 = inlined_call_operand.vmem [shape: bf16[2,16,16,4], index: 4, kind: output, shape index: {0}]   ;;  %s3830_s5 = inlined_call_operand.hbm [shape: f32[4,1,4], index: 5, kind: output, shape index: {1}]   ;;  %s3831_s6 = inlined_call_operand.hbm [shape: f32[4,1,4], index: 6, kind: output, shape index: {2}]  }
   0x1   :  { %3849 = sst [smem:[#allocation9_spill]] %s3825_s0 }
   0x2   :  { %3850 = sst [smem:[#allocation10_spill]] %s3826_s1 }
   0x3   :  { %3851 = sst [smem:[#allocation11_spill]] %s3828_s3 }
   0x4   :  { %12 = vsyncpa [#allocation3], 0 }
   0x5   :  { %14 = vsyncpa [#allocation3 + $0x1], 0 }
   0x6   :  { %15 = vsyncpa [#allocation5], 0 }
   0x7   :  { %17 = vsyncpa [#allocation5 + $0x1], 0  ;;  %s2810_s21 = smov 0   ;;  %s2812_s22 = smov 0  }
   0x8   :  { %s2814_s23 = smov 0   ;;  %s2816_s24 = smov 0  }
   0x9   :  { %s2818_s25 = smov 0   ;;  %s2820_s26 = smov 0  }
   0xa   :  { %s2822_s27 = smov 0   ;;  %s2824_s28 = smov 0  }
   0xb LB: > { %s2295_s29 = sadd.s32 4294967295, %s2765_s28   ;;  %s32_s30 = sadd.s32 1, %s2757_s26  ;;  %s2765_s28 = sphi %s2824_s28, %s23_s28   ;;  %s2761_s27 = sphi %s2822_s27, %s3877_s27   ;;  %s2757_s26 = sphi %s2820_s26, %s3876_s26   ;;  %s2753_s25 = sphi %s2818_s25, %s3875_s25   ;;  %s2749_s24 = sphi %s2816_s24, %s3874_s24   ;;  %s2745_s23 = sphi %s2814_s23, %s3873_s23   ;;  %s2741_s22 = sphi %s2812_s22, %s3872_s22   ;;  %s2737_s21 = sphi %s2810_s21, %s3871_s21  }
   0xc   : > { %s35_s7 = sadd.s32 1, %s2761_s27  ;;  %p33_p0 = scmp.ge.s32.totalorder %s32_s30, 2 }
   0xd   : > { %s2301_s8 = sshll.u32 %s2761_s27, 1  ;;  %s2296_s9 = sadd.s32 4294967294, %s2765_s28  }
   0xe   : > { %s183_s10 = sadd.s32 %s2757_s26, %s2301_s8  ;;  %s3879_s30 = smov (%p33_p0, %s32_s30), 0 }
   0xf   : > { %s3881_s7 = smov (!%p33_p0, %s35_s7), %s2761_s27  ;;  %p199_p1 = scmp.ne.s32.totalorder %s2745_s23, %s2741_s22 }
  0x10   : > { %p200_p2 = scmp.eq.s32.totalorder %s2295_s29, 3  ;;  %p37_p3 = scmp.ge.s32.totalorder %s3881_s7, 2 }
  0x11   : > { %p205_p4 = scmp.ne.s32.totalorder %s2741_s22, %s2737_s21  ;;  %p206_p6 = scmp.eq.s32.totalorder %s2296_s9, 3 }
  0x12   : > { %p2863_p5 = por %p200_p2, %p199_p1  ;;  %s3883_s7 = smov (%p37_p3, %s3881_s7), 0 }
  0x13   : > { %3853 = sst [smem:[#allocation8_spill]] %s3883_s7  ;;  %p2869_p7 = por %p206_p6, %p205_p4 }
  0x14   : > { %p2307_p8 = scmp.ge.s32.totalorder %s2765_s28, 1  ;;  %s2302_s13 = sshll.u32 %s3883_s7, 1 }
  0x15   : > { %p315_p9 = scmp.lt.s32.totalorder %s2765_s28, 5  ;;  %s185_s14 = sadd.s32 %s2302_s13, %s3879_s30 }
  0x16   : > { %s189_s15 = sadd.s32 1, %s2745_s23  ;;  %s186_s16 = ssub.s32 %s183_s10, %s185_s14 }
  0x17   : > { %p316_p10 = pnand %p2307_p8, %p315_p9  ;;  %p187_p11 = scmp.eq.s32.totalorder %s186_s16, 0 }
  0x18   : > { %s2882_s18 = sshll.u32 (!%p316_p10), %s2749_s24, 3  ;;  %p397_p12 = scmp.lt.s32.totalorder (!%p316_p10), %s2753_s25, 1 }
  0x19   : > { %s2879_s17 = scalar_select %p187_p11, %s2745_s23, %s189_s15  }
  0x1a   : > { %319 = sbr.rel (%p316_p10) target bundleno = 508 (0x1fc), region = 36  ;;  %p399_p13 = scmp.lt.s32.totalorder (!%p316_p10), %s2882_s18, 17 }
  0x1b   : > { %s3855_s0 = sld [smem:[#allocation9_spill]] (!%p316_p10)  ;;  %s3846_s16 = smov (!%p316_p10), 12  }
  0x1c   : > { %s3840_s13 = smov (!%p316_p10), 4   ;;  %s3844_s14 = smov (!%p316_p10), 20  }
  0x1d   : > { %s3865_s1 = sld [smem:[#allocation10_spill]] (!%p316_p10)  ;;  %s3866_s7 = smov (!%p316_p10), 12  }
  0x1e   : > { %s3869_s3 = sld [smem:[#allocation11_spill]] (!%p316_p10)  ;;  %p443_p2 = scmp.lt.s32.totalorder (!%p316_p10), %s2882_s18, 15 }
  0x1f   : > { %s2887_s19 = scalar_select %p397_p12, %s2753_s25, 1  ;;  %vm707_vm0 = vcmask 1042432   ;;  %vm708_vm1 = vcmask 1046532   ;;  %vm480_vm3 = vsmask.f32 3328  ;;  %vm1877_vm6 = vcmask 1041408  }
  0x20   : > { %s400_s20 = scalar_select %p399_p13, %s2882_s18, 17  ;;  %vm2908_vm2 = vmor %vm707_vm0, %vm708_vm1  ;;  %vm481_vm4 = vsmask.f32 7440  ;;  %vm1696_vm7 = vcmask 31744   ;;  %vm1721_vm8 = vcmask 64512   ;;  %vm1738_vm9 = vcmask 97280  }
  0x21   : > { %s2891_s29 = smul.u32 54, %s2887_s19  ;;  %vm2970_vm5 = vmor %vm480_vm3, %vm481_vm4  ;;  %vm1755_vm10 = vcmask 130048   ;;  %vm1772_vm11 = vcmask 162816   ;;  %vm1789_vm12 = vcmask 195584   ;;  %vm1806_vm13 = vcmask 228352  }
  0x22   : > { %s2551_s8 = smul.u32 3, %s400_s20  ;;  %s3834_s20 = smov 24   ;;  %vm1823_vm14 = vcmask 261120   ;;  %vm1860_vm15 = vcmask 293888   ;;  %vm2039_vm0 = vcmask 27648   ;;  %vm1967_vm1 = vcmask 24576  }
  0x24   : > { %s403_s9 = sadd.s32 %s2891_s29, %s2551_s8  ;;  %s3838_s8 = smov 8  }
  0x25   : > { %s2309_s10 = sshll.u32 %s403_s9, 2  ;;  %s3832_s9 = smov 32  }
  0x26   : > { %s2897_s15 = scalar_lea.vmem %s3855_s0, %s2309_s10  ;;  %s3842_s10 = smov 16  }
  0x27   : > { %v2525_v0 = vld [vmem:[%s2897_s15 + $0xc] sm:$0xff]  ;;  %v2901_v1 = vld [vmem:[%s2897_s15 + $0x4] sm:$0xf]  ;;  %v2904_v2 = vld [vmem:[%s2897_s15 + $0x8] sm:$0x1]  ;;  %s3864_s0 = smov 8  }
  0x28   : > { %v503_v3 = vshll.u32 %v2904_v2, 16  ;;  %v675_v4 = vld [vmem:[%s2897_s15] sm:$0xe]  ;;  %v712_v6 = vrot.slane %v2901_v1, 5  ;;  %v715_v7 = vrot.slane %v2904_v2, 5  ;;  %1482 = vrot.lane.b32.xlu1 %v2525_v0, %s3846_s16  ;;  %v2533_v11 = vld [vmem:[%s2897_s15 + $0x18] sm:$0xff] }
  0x29   : > { %v2318_v8 = vrot.slane %v675_v4, 9  ;;  %v2916_v9 = vld [vmem:[%s2897_s15 + $0x1c] sm:$0xf]  ;;  %v2919_v10 = vld [vmem:[%s2897_s15 + $0x20] sm:$0x1]  ;;  %v497_v13 = vshrl.u32 %v2901_v1, 16  ;;  %1606 = vrot.lane.b32.xlu2 %v2533_v11, %s3834_s20 }
  0x2a   : > { %v714_v12 = vrot.slane %v712_v6, 4  ;;  %v2380_v14 = vld [vmem:[%s2897_s15 + $0x18] sm:$0xe]  ;;  %v1291_v15 = vrot.slane %v2916_v9, 5  ;;  %v1294_v16 = vrot.slane %v2919_v10, 5  ;;  %v493_v21 = vshll.u32 %v2901_v1, 16 }
  0x2b   : > { %v713_v17 = vsel %vm2908_vm2, %v2318_v8, %v712_v6  ;;  %v2386_v18 = vrot.slane %v2380_v14, 9  ;;  %v2930_v19 = vld [vmem:[%s2897_s15 + $0x1c] sm:$0xf]  ;;  %v2933_v20 = vld [vmem:[%s2897_s15 + $0x20] sm:$0x1]  ;;  %v2527_v42 = vld [vmem:[%s2897_s15 + $0x24] sm:$0xff] }
  0x2c   : > { %v716_v22 = vsel %vm2908_vm2, %v714_v12, %v715_v7  ;;  %v1410_v23 = vunpack.c.l.b16 %v713_v17  ;;  %v1293_v24 = vrot.slane %v1291_v15, 4  ;;  %v677_v25 = vld [vmem:[%s2897_s15 + $0x18] sm:$0xe]  ;;  %v726_v26 = vrot.slane %v2930_v19, 5  ;;  %v2326_v27 = vld [vmem:[%s2897_s15 + $0xc] sm:$0xf] }
  0x2d   : > { %v1411_v28 = vunpack.c.l.b16 %v716_v22  ;;  %v1292_v29 = vsel %vm2908_vm2, %v2386_v18, %v1291_v15  ;;  %v2320_v30 = vrot.slane %v677_v25, 9  ;;  %v729_v31 = vrot.slane %v2933_v20, 5  ;;  %v2945_v32 = vld [vmem:[%s2897_s15 + $0x10] sm:$0xf]  ;;  %v2952_v40 = vld [vmem:[%s2897_s15 + $0x14] sm:$0x1] }
  0x2e   : > { %v1295_v33 = vsel %vm2908_vm2, %v1293_v24, %v1294_v16  ;;  %v1659_v34 = vunpack.c.l.b16 %v1292_v29  ;;  %v728_v35 = vrot.slane %v726_v26, 4  ;;  %v792_v36 = vshrl.u32 %v2326_v27, 16  ;;  %v456_v43 = vld [vmem:[%s2897_s15] sm:$0xf]  ;;  %v464_v56 = vld [vmem:[%s2897_s15 + $0x30] sm:$0xf] }
  0x2f   : > { %v1426_v37 = vpack.c.b16 %v1411_v28, %v1410_v23  ;;  %v1660_v38 = vunpack.c.l.b16 %v1295_v33  ;;  %v727_v39 = vsel %vm2908_vm2, %v2320_v30, %v726_v26  ;;  %v795_v41 = vshll.u32 %v2326_v27, 16  ;;  %v2966_v61 = vld [vmem:[%s2897_s15 + $0x34] sm:$0xf]  ;;  %v2977_v15 = vld [vmem:[%s2897_s15 + $0x38] sm:$0x1]  ;;  %s3058_s20 = sadd.s32 8, %s2882_s18 }
  0x30   : > { %v730_v44 = vsel %vm2908_vm2, %v728_v35, %v729_v31  ;;  %v1414_v45 = vunpack.c.l.b16 %v727_v39  ;;  %v794_v46 = vrot.slane %v792_v36, 4  ;;  %v801_v47 = vshll.u32 %v2945_v32, 16  ;;  %v2347_v29 = vld [vmem:[%s2897_s15 + $0xc] sm:$0xe]  ;;  %v2362_v35 = vld [vmem:[%s2897_s15 + $0x18] sm:$0xf] }
  0x31   : > { %1434 = vrot.lane.b32.xlu0 %v1426_v37, %s3838_s8  ;;  %v1673_v48 = vpack.c.b16 %v1660_v38, %v1659_v34  ;;  %v1415_v49 = vunpack.c.l.b16 %v730_v44  ;;  %v797_v50 = vrot.slane %v795_v41, 5  ;;  %v805_v51 = vshrl.u32 %v2945_v32, 16  ;;  %1486 = vrot.lane.b32.xlu2 %v2527_v42, %s3846_s16  ;;  %p416_p1 = scmp.lt.s32.totalorder %s3058_s20, 17  ;;  %s3889_s18 = smov (!%p443_p2, %s2882_s18), 15 }
  0x32   : > { %v803_v52 = vrot.slane %v801_v47, 5  ;;  %v811_v53 = vshll.u32 %v2952_v40, 16  ;;  %v484_v54 = vshrl.u32 %v456_v43, 16  ;;  %v487_v55 = vshll.u32 %v456_v43, 16 }
  0x33   : > { %1680 = vrot.lane.b32.xlu1 %v1673_v48, %s3832_s9  ;;  %v1428_v57 = vpack.c.b16 %v1415_v49, %v1414_v45  ;;  %v798_v58 = vor.u32 %v797_v50, %v794_v46  ;;  %v807_v59 = vrot.slane %v805_v51, 4  ;;  %v495_v60 = vrot.slane %v493_v21, 5  ;;  %s3836_s9 = smov 28  }
  0x34   : > { %v813_v63 = vrot.slane %v811_v53, 5  ;;  %v486_v0 = vrot.slane %v484_v54, 4  ;;  %v489_v1 = vrot.slane %v487_v55, 5  ;;  %v499_v4 = vrot.slane %v497_v13, 4  ;;  %v2330_v53 = vld [vmem:[%s2897_s15 + $0x24] sm:$0xf] }
  0x35   : > { %v799_v6 = vrot.slane %v798_v58, 4  ;;  %v808_v7 = vor.u32 %v807_v59, %v803_v52  ;;  %v505_v8 = vrot.slane %v503_v3, 5  ;;  %v580_v11 = vshrl.u32 %v464_v56, 16 }
  0x36   : > { %v490_v12 = vor.u32 %v489_v1, %v486_v0  ;;  %v500_v14 = vor.u32 %v499_v4, %v495_v60  ;;  %v583_v16 = vshll.u32 %v464_v56, 16  ;;  %v589_v17 = vshll.u32 %v2966_v61, 16  ;;  %v3010_v1 = vld [vmem:[%s2897_s15 + $0x28] sm:$0xf] }
  0x37   : > { %v804_v18 = vsel %vm2970_vm5, %v799_v6, %v803_v52  ;;  %v809_v21 = vrot.slane %v808_v7, 4  ;;  %v582_v22 = vrot.slane %v580_v11, 4  ;;  %v593_v13 = vshrl.u32 %v2966_v61, 16  ;;  %v3013_v11 = vld [vmem:[%s2897_s15 + $0x2c] sm:$0x1] }
  0x38   : > { %v1498_v23 = vunpack.c.l.b16 %v804_v18  ;;  %v491_v2 = vrot.slane %v490_v12, 4  ;;  %v501_v3 = vrot.slane %v500_v14, 4  ;;  %v585_v24 = vrot.slane %v583_v16, 5  ;;  %v460_v14 = vld [vmem:[%s2897_s15 + $0x18] sm:$0xf] }
  0x39   : > { %1438 = vrot.lane.b32.xlu0 %v1428_v57, %s3838_s8  ;;  %v814_v25 = vsel %vm2970_vm5, %v809_v21, %v813_v63  ;;  %v591_v26 = vrot.slane %v589_v17, 5  ;;  %v595_v27 = vrot.slane %v593_v13, 4  ;;  %v599_v28 = vshll.u32 %v2977_v15, 16 }
  0x3a   : > { %v1499_v30 = vunpack.c.l.b16 %v814_v25  ;;  %v496_v31 = vsel %vm2970_vm5, %v491_v2, %v495_v60  ;;  %v506_v33 = vsel %vm2970_vm5, %v501_v3, %v505_v8  ;;  %v586_v34 = vor.u32 %v585_v24, %v582_v22 }
  0x3b   : > { %v1370_v36 = vunpack.c.l.b16 %v496_v31  ;;  %v1371_v37 = vunpack.c.l.b16 %v506_v33  ;;  %v596_v38 = vor.u32 %v595_v27, %v591_v26  ;;  %v601_v39 = vrot.slane %v599_v28, 5 }
  0x3c   : > { %v1514_v41 = vpack.c.b16 %v1499_v30, %v1498_v23  ;;  %v587_v42 = vrot.slane %v586_v34, 4  ;;  %v2354_v43 = vrot.slane %v2347_v29, 9  ;;  %v1017_v44 = vrot.slane %v2945_v32, 5  ;;  %v679_v29 = vld [vmem:[%s2897_s15 + $0x30] sm:$0xe] }
  0x3d   : > { %v1386_v45 = vpack.c.b16 %v1371_v37, %v1370_v36  ;;  %v597_v46 = vrot.slane %v596_v38, 4  ;;  %v1020_v47 = vrot.slane %v2952_v40, 5  ;;  %v1094_v48 = vshrl.u32 %v2362_v35, 16 }
  0x3e   : > { %1522 = vrot.lane.b32.xlu1 %v1514_v41, %s3842_s10  ;;  %v592_v49 = vsel %vm2970_vm5, %v587_v42, %v591_v26  ;;  %v1018_v50 = vsel %vm2908_vm2, %v2354_v43, %v1017_v44  ;;  %v1019_v51 = vrot.slane %v1017_v44, 4  ;;  %v1097_v52 = vshll.u32 %v2362_v35, 16 }
  0x3f   : > { %v602_v32 = vsel %vm2970_vm5, %v597_v46, %v601_v39  ;;  %v1378_v54 = vunpack.c.l.b16 %v592_v49  ;;  %v1538_v55 = vunpack.c.l.b16 %v1018_v50  ;;  %v1096_v40 = vrot.slane %v1094_v48, 4  ;;  %v2334_v48 = vld [vmem:[%s2897_s15 + $0x3c] sm:$0xf] }
  0x40   : > { %v1379_v56 = vunpack.c.l.b16 %v602_v32  ;;  %v1021_v57 = vsel %vm2908_vm2, %v1019_v51, %v1020_v47  ;;  %v1099_v58 = vrot.slane %v1097_v52, 5  ;;  %v1103_v59 = vshll.u32 %v2916_v9, 16 }
  0x41   : > { %1394 = vrot.lane.b32.xlu0 %v1386_v45, %s3840_s13  ;;  %v1539_v60 = vunpack.c.l.b16 %v1021_v57  ;;  %v1107_v63 = vshrl.u32 %v2916_v9, 16  ;;  %v1113_v0 = vshll.u32 %v2919_v10, 16  ;;  %v840_v4 = vshrl.u32 %v2330_v53, 16 }
  0x42   : > { %v1390_v6 = vpack.c.b16 %v1379_v56, %v1378_v54  ;;  %v1100_v7 = vor.u32 %v1099_v58, %v1096_v40  ;;  %v1105_v8 = vrot.slane %v1103_v59, 5  ;;  %v843_v12 = vshll.u32 %v2330_v53, 16  ;;  %v3037_v56 = vld [vmem:[%s2897_s15 + $0x40] sm:$0xf] }
  0x43   : > { %v1554_v16 = vpack.c.b16 %v1539_v60, %v1538_v55  ;;  %v1109_v17 = vrot.slane %v1107_v63, 4  ;;  %v1115_v18 = vrot.slane %v1113_v0, 5  ;;  %v842_v21 = vrot.slane %v840_v4, 4  ;;  %v3045_v63 = vld [vmem:[%s2897_s15 + $0x44] sm:$0x1] }
  0x44   : > { %v1101_v22 = vrot.slane %v1100_v7, 4  ;;  %v845_v13 = vrot.slane %v843_v12, 5  ;;  %v849_v9 = vshll.u32 %v3010_v1, 16  ;;  %v853_v10 = vshrl.u32 %v3010_v1, 16  ;;  %v2349_v7 = vld [vmem:[%s2897_s15 + $0x24] sm:$0xe] }
  0x45   : > { %1562 = vrot.lane.b32.xlu2 %v1554_v16, %s3844_s14  ;;  %v1110_v23 = vor.u32 %v1109_v17, %v1105_v8  ;;  %v859_v2 = vshll.u32 %v3013_v11, 16  ;;  %v532_v3 = vshrl.u32 %v460_v14, 16  ;;  %v535_v24 = vshll.u32 %v460_v14, 16 }
  0x46   : > { %1402 = vrot.lane.b32.xlu1 %v1390_v6, %s3840_s13  ;;  %v1106_v25 = vsel %vm2970_vm5, %v1101_v22, %v1105_v8  ;;  %v846_v26 = vor.u32 %v845_v13, %v842_v21  ;;  %v851_v27 = vrot.slane %v849_v9, 5  ;;  %v855_v28 = vrot.slane %v853_v10, 4  ;;  %v2366_v13 = vld [vmem:[%s2897_s15 + $0x30] sm:$0xf] }
  0x47   : > { %v1111_v30 = vrot.slane %v1110_v23, 4  ;;  %v1622_v31 = vunpack.c.l.b16 %v1106_v25  ;;  %v861_v33 = vrot.slane %v859_v2, 5  ;;  %v534_v34 = vrot.slane %v532_v3, 4 }
  0x48   : > { %v847_v35 = vrot.slane %v846_v26, 4  ;;  %v856_v36 = vor.u32 %v855_v28, %v851_v27  ;;  %v537_v37 = vrot.slane %v535_v24, 5  ;;  %v541_v38 = vshll.u32 %v2930_v19, 16 }
  0x49   : > { %v1116_v39 = vsel %vm2970_vm5, %v1111_v30, %v1115_v18  ;;  %v545_v41 = vshrl.u32 %v2930_v19, 16  ;;  %v551_v42 = vshll.u32 %v2933_v20, 16  ;;  %v2322_v43 = vrot.slane %v679_v29, 9 }
  0x4a   : > { %v1623_v44 = vunpack.c.l.b16 %v1116_v39  ;;  %v852_v45 = vsel %vm2970_vm5, %v847_v35, %v851_v27  ;;  %v857_v46 = vrot.slane %v856_v36, 4  ;;  %v538_v47 = vor.u32 %v537_v37, %v534_v34  ;;  %v3063_v27 = vld [vmem:[%s2897_s15 + $0x34] sm:$0xf]  ;;  %v3069_v36 = vld [vmem:[%s2897_s15 + $0x38] sm:$0x1] }
  0x4b   : > { %v1502_v49 = vunpack.c.l.b16 %v852_v45  ;;  %v543_v50 = vrot.slane %v541_v38, 5  ;;  %v547_v51 = vrot.slane %v545_v41, 4  ;;  %v553_v52 = vrot.slane %v551_v42, 5  ;;  %v2351_v41 = vld [vmem:[%s2897_s15 + $0x3c] sm:$0xe] }
  0x4c   : > { %v1636_v53 = vpack.c.b16 %v1623_v44, %v1622_v31  ;;  %v862_v19 = vsel %vm2970_vm5, %v857_v46, %v861_v33  ;;  %v539_v32 = vrot.slane %v538_v47, 4  ;;  %v740_v20 = vrot.slane %v2966_v61, 5 }
  0x4d   : > { %v1503_v54 = vunpack.c.l.b16 %v862_v19  ;;  %v548_v55 = vor.u32 %v547_v51, %v543_v50  ;;  %v743_v40 = vrot.slane %v2977_v15, 5  ;;  %v888_v57 = vshrl.u32 %v2334_v48, 16  ;;  %v458_v19 = vld [vmem:[%s2897_s15 + $0xc] sm:$0xf] }
  0x4e   : > { %1643 = vrot.lane.b32.xlu0 %v1636_v53, %s3836_s9  ;;  %v544_v58 = vsel %vm2970_vm5, %v539_v32, %v543_v50  ;;  %v741_v59 = vsel %vm2908_vm2, %v2322_v43, %v740_v20  ;;  %v742_v60 = vrot.slane %v740_v20, 4  ;;  %v891_v61 = vshll.u32 %v2334_v48, 16  ;;  %s427_s9 = sadd.s32 1, %s3058_s20  ;;  %s3887_s20 = smov (!%p416_p1, %s3058_s20), 17 }
  0x4f   : > { %v1516_v0 = vpack.c.b16 %v1503_v54, %v1502_v49  ;;  %v549_v15 = vrot.slane %v548_v55, 4  ;;  %v1374_v4 = vunpack.c.l.b16 %v544_v58  ;;  %v1418_v6 = vunpack.c.l.b16 %v741_v59  ;;  %p430_p0 = scmp.lt.s32.totalorder %s427_s9, 17 }
  0x50   : > { %v744_v8 = vsel %vm2908_vm2, %v742_v60, %v743_v40  ;;  %v890_v12 = vrot.slane %v888_v57, 4  ;;  %v893_v14 = vrot.slane %v891_v61, 5  ;;  %v897_v16 = vshll.u32 %v3037_v56, 16  ;;  %v3086_v40 = vld [vmem:[%s2897_s15 + $0x10] sm:$0xf]  ;;  %v2529_v61 = vld [vmem:[%s2897_s15 + $0x3c] sm:$0xff] }
  0x51   : > { %1526 = vrot.lane.b32.xlu1 %v1516_v0, %s3842_s10  ;;  %v554_v17 = vsel %vm2970_vm5, %v549_v15, %v553_v52  ;;  %v1419_v18 = vunpack.c.l.b16 %v744_v8  ;;  %v901_v21 = vshrl.u32 %v3037_v56, 16  ;;  %v907_v22 = vshll.u32 %v3045_v63, 16  ;;  %s3885_s9 = smov (!%p430_p0, %s427_s9), 17 }
  0x52   : > { %v1375_v9 = vunpack.c.l.b16 %v554_v17  ;;  %v894_v10 = vor.u32 %v893_v14, %v890_v12  ;;  %v899_v23 = vrot.slane %v897_v16, 5  ;;  %v2356_v2 = vrot.slane %v2349_v7, 9  ;;  %v2382_v16 = vld [vmem:[%s2897_s15 + $0x30] sm:$0xe] }
  0x53   : > { %v1430_v3 = vpack.c.b16 %v1419_v18, %v1418_v6  ;;  %v903_v24 = vrot.slane %v901_v21, 4  ;;  %v909_v25 = vrot.slane %v907_v22, 5  ;;  %v1031_v26 = vrot.slane %v3010_v1, 5 }
  0x54   : > { %v1388_v28 = vpack.c.b16 %v1375_v9, %v1374_v4  ;;  %v895_v29 = vrot.slane %v894_v10, 4  ;;  %v1034_v30 = vrot.slane %v3013_v11, 5  ;;  %v1142_v31 = vshrl.u32 %v2366_v13, 16  ;;  %v3096_v4 = vld [vmem:[%s2897_s15 + $0x14] sm:$0x1] }
  0x55   : > { %v904_v33 = vor.u32 %v903_v24, %v899_v23  ;;  %v1032_v34 = vsel %vm2908_vm2, %v2356_v2, %v1031_v26  ;;  %v1033_v35 = vrot.slane %v1031_v26, 4  ;;  %v1145_v37 = vshll.u32 %v2366_v13, 16  ;;  %v3114_v26 = vld [vmem:[%s2897_s15 + $0x4c] sm:$0xf] }
  0x56   : > { %1398 = vrot.lane.b32.xlu2 %v1388_v28, %s3840_s13  ;;  %1442 = vrot.lane.b32.xlu0 %v1430_v3, %s3838_s8  ;;  %v900_v1 = vsel %vm2970_vm5, %v895_v29, %v899_v23  ;;  %v1542_v38 = vunpack.c.l.b16 %v1032_v34  ;;  %v1144_v39 = vrot.slane %v1142_v31, 4  ;;  %v1151_v11 = vshll.u32 %v3063_v27, 16  ;;  %s2554_s8 = smul.u32 3, %s3885_s9  ;;  %v2384_v23 = vld [vmem:[%s2897_s15 + $0x48] sm:$0xe]  ;;  %s3861_s9 = smov 24  }
  0x57   : > { %v905_v42 = vrot.slane %v904_v33, 4  ;;  %v1506_v43 = vunpack.c.l.b16 %v900_v1  ;;  %v1035_v44 = vsel %vm2908_vm2, %v1033_v35, %v1034_v30  ;;  %v1147_v45 = vrot.slane %v1145_v37, 5  ;;  %v3117_v33 = vld [vmem:[%s2897_s15 + $0x50] sm:$0x1]  ;;  %v676_v34 = vld [vmem:[%s2897_s15 + $0xc] sm:$0xe] }
  0x58   : > { %v1543_v46 = vunpack.c.l.b16 %v1035_v44  ;;  %v1153_v47 = vrot.slane %v1151_v11, 5  ;;  %v1155_v48 = vshrl.u32 %v3063_v27, 16  ;;  %v1161_v49 = vshll.u32 %v3069_v36, 16  ;;  %s3089_s13 = sadd.s32 %s2554_s8, %s2891_s29  ;;  %s3860_s8 = smov 28  }
  0x59   : > { %v910_v50 = vsel %vm2970_vm5, %v905_v42, %v909_v25  ;;  %v1148_v51 = vor.u32 %v1147_v45, %v1144_v39  ;;  %v2358_v52 = vrot.slane %v2351_v41, 9  ;;  %v1045_v53 = vrot.slane %v3037_v56, 5  ;;  %v2535_v42 = vld [vmem:[%s2897_s15 + $0x30] sm:$0xff] }
  0x5a   : > { %v1507_v32 = vunpack.c.l.b16 %v910_v50  ;;  %v1556_v20 = vpack.c.b16 %v1543_v46, %v1542_v38  ;;  %v1157_v54 = vrot.slane %v1155_v48, 4  ;;  %v1163_v55 = vrot.slane %v1161_v49, 5  ;;  %v3132_v50 = vld [vmem:[%s2897_s15 + $0x4c] sm:$0xf] }
  0x5b   : > { %v1149_v57 = vrot.slane %v1148_v51, 4  ;;  %v1046_v58 = vsel %vm2908_vm2, %v2358_v52, %v1045_v53  ;;  %v1047_v59 = vrot.slane %v1045_v53, 4  ;;  %v1048_v60 = vrot.slane %v3045_v63, 5 }
  0x5c   : > { %v1518_v56 = vpack.c.b16 %v1507_v32, %v1506_v43  ;;  %v1158_v0 = vor.u32 %v1157_v54, %v1153_v47  ;;  %v1546_v15 = vunpack.c.l.b16 %v1046_v58  ;;  %v508_v6 = vshrl.u32 %v458_v19, 16  ;;  %v3140_v32 = vld [vmem:[%s2897_s15 + $0x50] sm:$0x1]  ;;  %v3149_v58 = vld [vmem:[%s2897_s15 + $0x1c] sm:$0xf] }
  0x5d   : > { %v1154_v7 = vsel %vm2970_vm5, %v1149_v57, %v1153_v47  ;;  %v1049_v8 = vsel %vm2908_vm2, %v1047_v59, %v1048_v60  ;;  %v511_v12 = vshll.u32 %v458_v19, 16  ;;  %v517_v14 = vshll.u32 %v3086_v40, 16  ;;  %v2348_v59 = vld [vmem:[%s2897_s15 + $0x18] sm:$0xe] }
  0x5e   : > { %1530 = vrot.lane.b32.xlu1 %v1518_v56, %s3842_s10  ;;  %1566 = vrot.lane.b32.xlu0 %v1556_v20, %s3844_s14  ;;  %v1159_v63 = vrot.slane %v1158_v0, 4  ;;  %v1626_v17 = vunpack.c.l.b16 %v1154_v7  ;;  %v1547_v18 = vunpack.c.l.b16 %v1049_v8  ;;  %v510_v21 = vrot.slane %v508_v6, 4  ;;  %v681_v20 = vld [vmem:[%s2897_s15 + $0x48] sm:$0xe]  ;;  %v3158_v8 = vld [vmem:[%s2897_s15 + $0x20] sm:$0x1] }
  0x5f   : > { %v513_v22 = vrot.slane %v511_v12, 5  ;;  %v519_v13 = vrot.slane %v517_v14, 5  ;;  %v521_v9 = vshrl.u32 %v3086_v40, 16  ;;  %v527_v10 = vshll.u32 %v3096_v4, 16  ;;  %1490 = vrot.lane.b32.xlu2 %v2529_v61, %s3846_s16  ;;  %s3862_s10 = smov 4   ;;  %s2553_s16 = smul.u32 3, %s3887_s20 }
  0x60   : > { %v1164_v2 = vsel %vm2970_vm5, %v1159_v63, %v1163_v55  ;;  %v1558_v3 = vpack.c.b16 %v1547_v18, %v1546_v15  ;;  %v2388_v24 = vrot.slane %v2382_v16, 9  ;;  %v1305_v25 = vrot.slane %v3063_v27, 5 }
  0x61   : > { %v1627_v28 = vunpack.c.l.b16 %v1164_v2  ;;  %v514_v29 = vor.u32 %v513_v22, %v510_v21  ;;  %v523_v30 = vrot.slane %v521_v9, 4  ;;  %v529_v31 = vrot.slane %v527_v10, 5  ;;  %s3209_s20 = sadd.s32 %s2553_s16, %s2891_s29  ;;  %s3868_s16 = smov 16  }
  0x62   : > { %v1306_v35 = vsel %vm2908_vm2, %v2388_v24, %v1305_v25  ;;  %v1307_v37 = vrot.slane %v1305_v25, 4  ;;  %v1308_v1 = vrot.slane %v3069_v36, 5  ;;  %v2390_v38 = vrot.slane %v2384_v23, 9  ;;  %s2311_s29 = sshll.u32 %s3209_s20, 2 }
  0x63   : > { %v1638_v39 = vpack.c.b16 %v1627_v28, %v1626_v17  ;;  %v515_v27 = vrot.slane %v514_v29, 4  ;;  %v524_v11 = vor.u32 %v523_v30, %v519_v13  ;;  %v1663_v41 = vunpack.c.l.b16 %v1306_v35  ;;  %v2370_v17 = vld [vmem:[%s2897_s15 + $0x48] sm:$0xf]  ;;  %v2353_v28 = vld [vmem:[%s2897_s15 + $0x54] sm:$0xe]  ;;  %s3235_s20 = scalar_lea.vmem %s3865_s1, %s2311_s29  ;;  %s3867_s29 = smov 20  }
  0x64   : > { %v1309_v43 = vsel %vm2908_vm2, %v1307_v37, %v1308_v1  ;;  %v1319_v44 = vrot.slane %v3114_v26, 5  ;;  %v1322_v45 = vrot.slane %v3117_v33, 5  ;;  %v2319_v46 = vrot.slane %v676_v34, 9  ;;  %v3188_v35 = vld [vmem:[%s2897_s15 + $0x58] sm:$0xf]  ;;  %s2313_s1 = sshll.u32 %s3089_s13, 2 }
  0x65   : > { %v520_v47 = vsel %vm2970_vm5, %v515_v27, %v519_v13  ;;  %v525_v36 = vrot.slane %v524_v11, 4  ;;  %v1664_v48 = vunpack.c.l.b16 %v1309_v43  ;;  %v719_v49 = vrot.slane %v3086_v40, 5  ;;  %v2537_v13 = vld [vmem:[%s2897_s15 + $0x48] sm:$0xff]  ;;  %v3191_v37 = vld [vmem:[%s2897_s15 + $0x5c] sm:$0x1] }
  0x66   : > { %1647 = vrot.lane.b32.xlu1 %v1638_v39, %s3860_s8  ;;  %1570 = vrot.lane.b32.xlu0 %v1558_v3, %s3844_s14  ;;  %v1372_v51 = vunpack.c.l.b16 %v520_v47  ;;  %v1320_v52 = vsel %vm2908_vm2, %v2390_v38, %v1319_v44  ;;  %v1321_v53 = vrot.slane %v1319_v44, 4  ;;  %v722_v19 = vrot.slane %v3096_v4, 5  ;;  %s3863_s14 = smov 32   ;;  %v468_v11 = vld [vmem:[%s2897_s15 + $0x48] sm:$0xf] }
  0x67   : > { %v530_v54 = vsel %vm2970_vm5, %v525_v36, %v529_v31  ;;  %v1675_v55 = vpack.c.b16 %v1664_v48, %v1663_v41  ;;  %v1667_v40 = vunpack.c.l.b16 %v1320_v52  ;;  %1610 = vrot.lane.b32.xlu2 %v2535_v42, %s3861_s9  ;;  %v720_v57 = vsel %vm2908_vm2, %v2319_v46, %v719_v49 }
  0x68   : > { %v1373_v60 = vunpack.c.l.b16 %v530_v54  ;;  %v1323_v61 = vsel %vm2908_vm2, %v1321_v53, %v1322_v45  ;;  %v721_v56 = vrot.slane %v719_v49, 4  ;;  %v1412_v0 = vunpack.c.l.b16 %v720_v57  ;;  %v3206_v57 = vld [vmem:[%s2897_s15 + $0x28] sm:$0xf] }
  0x69   : > { %v1668_v15 = vunpack.c.l.b16 %v1323_v61  ;;  %v2324_v4 = vrot.slane %v681_v20, 9  ;;  %v754_v6 = vrot.slane %v3132_v50, 5  ;;  %v757_v7 = vrot.slane %v3140_v32, 5 }
  0x6a   : > { %v1387_v12 = vpack.c.b16 %v1373_v60, %v1372_v51  ;;  %v723_v14 = vsel %vm2908_vm2, %v721_v56, %v722_v19  ;;  %v2355_v16 = vrot.slane %v2348_v59, 9  ;;  %v1024_v63 = vrot.slane %v3149_v58, 5 }
  0x6b   : > { %v1413_v18 = vunpack.c.l.b16 %v723_v14  ;;  %v755_v21 = vsel %vm2908_vm2, %v2324_v4, %v754_v6  ;;  %v756_v22 = vrot.slane %v754_v6, 4  ;;  %v1027_v23 = vrot.slane %v3158_v8, 5  ;;  %v2328_v14 = vld [vmem:[%s2897_s15 + $0x18] sm:$0xf] }
  0x6c   : > { %v3169_v9 = vsel %vm2908_vm2, %v2355_v16, %v1024_v63  ;;  %v1026_v10 = vrot.slane %v1024_v63, 4  ;;  %v1677_v2 = vpack.c.b16 %v1668_v15, %v1667_v40  ;;  %v1422_v24 = vunpack.c.l.b16 %v755_v21 }
  0x6d   : > { %v758_v3 = vsel %vm2908_vm2, %v756_v22, %v757_v7  ;;  %v1190_v25 = vshrl.u32 %v2370_v17, 16  ;;  %v1427_v29 = vpack.c.b16 %v1413_v18, %v1412_v0  ;;  %v1193_v31 = vshll.u32 %v2370_v17, 16  ;;  %v2381_v0 = vld [vmem:[%s2897_s15 + $0x24] sm:$0xe] }
  0x6e   : > { %1396 = vrot.lane.b32.xlu1 %v1387_v12, %s3862_s10  ;;  %1684 = vrot.lane.b32.xlu0 %v1675_v55, %s3863_s14  ;;  %v3184_v30 = vsel %vm2908_vm2, %v1026_v10, %v1027_v23  ;;  %v1199_v34 = vshll.u32 %v3114_v26, 16  ;;  %v1540_v1 = vunpack.c.l.b16 %v3169_v9  ;;  %v1203_v39 = vshrl.u32 %v3114_v26, 16  ;;  %v3221_v12 = vld [vmem:[%s2897_s15 + $0x2c] sm:$0x1] }
  0x6f   : > { %1614 = vrot.lane.b32.xlu2 %v2537_v13, %s3861_s9  ;;  %v1192_v38 = vrot.slane %v1190_v25, 4  ;;  %v1209_v27 = vshll.u32 %v3117_v33, 16  ;;  %v1423_v41 = vunpack.c.l.b16 %v758_v3  ;;  %v1195_v42 = vrot.slane %v1193_v31, 5 }
  0x70   : > { %v1201_v43 = vrot.slane %v1199_v34, 5  ;;  %v2360_v44 = vrot.slane %v2353_v28, 9  ;;  %v1541_v45 = vunpack.c.l.b16 %v3184_v30  ;;  %v1205_v46 = vrot.slane %v1203_v39, 4 }
  0x71   : > { %v1211_v47 = vrot.slane %v1209_v27, 5  ;;  %v1059_v36 = vrot.slane %v3188_v35, 5  ;;  %v1196_v48 = vor.u32 %v1195_v42, %v1192_v38  ;;  %v1062_v49 = vrot.slane %v3191_v37, 5  ;;  %v678_v38 = vld [vmem:[%s2897_s15 + $0x24] sm:$0xe] }
  0x72   : > { %v628_v26 = vshrl.u32 %v468_v11, 16  ;;  %v631_v33 = vshll.u32 %v468_v11, 16  ;;  %v1206_v51 = vor.u32 %v1205_v46, %v1201_v43  ;;  %v637_v19 = vshll.u32 %v3132_v50, 16  ;;  %v3243_v42 = vld [vmem:[%s2897_s15 + $0x28] sm:$0xf] }
  0x73   : > { %v1060_v52 = vsel %vm2908_vm2, %v2360_v44, %v1059_v36  ;;  %v1061_v53 = vrot.slane %v1059_v36, 4  ;;  %v1432_v20 = vpack.c.b16 %v1423_v41, %v1422_v24  ;;  %v1197_v54 = vrot.slane %v1196_v48, 4  ;;  %v781_v46 = vld [vmem:[%s3235_s20] sm:$0xf] }
  0x74   : > { %v630_v55 = vrot.slane %v628_v26, 4  ;;  %v633_v40 = vrot.slane %v631_v33, 5  ;;  %v1207_v59 = vrot.slane %v1206_v51, 4  ;;  %v639_v61 = vrot.slane %v637_v19, 5 }
  0x75   : > { %v1063_v60 = vsel %vm2908_vm2, %v1061_v53, %v1062_v49  ;;  %v641_v56 = vshrl.u32 %v3132_v50, 16  ;;  %v1202_v15 = vsel %vm2970_vm5, %v1197_v54, %v1201_v43  ;;  %v1550_v4 = vunpack.c.l.b16 %v1060_v52  ;;  %v3257_v49 = vld [vmem:[%s2897_s15 + $0x2c] sm:$0x1] }
  0x76   : > { %1688 = vrot.lane.b32.xlu1 %v1677_v2, %s3863_s14  ;;  %1436 = vrot.lane.b32.xlu0 %v1427_v29, %s3864_s0  ;;  %v634_v6 = vor.u32 %v633_v40, %v630_v55  ;;  %v647_v7 = vshll.u32 %v3140_v32, 16  ;;  %v1212_v16 = vsel %vm2970_vm5, %v1207_v59, %v1211_v47  ;;  %v1630_v50 = vunpack.c.l.b16 %v1202_v15  ;;  %v2526_v2 = vld [vmem:[%s2897_s15 + $0x18] sm:$0xff] }
  0x77   : > { %v1551_v63 = vunpack.c.l.b16 %v1063_v60  ;;  %v643_v17 = vrot.slane %v641_v56, 4  ;;  %v1631_v18 = vunpack.c.l.b16 %v1212_v16  ;;  %v2387_v13 = vrot.slane %v2381_v0, 9  ;;  %v3269_v60 = vld [vmem:[%s3235_s20 + $0x8] sm:$0x1]  ;;  %v2531_v56 = vld [vmem:[%s2897_s15 + $0x54] sm:$0xff] }
  0x78   : > { %v635_v21 = vrot.slane %v634_v6, 4  ;;  %v649_v22 = vrot.slane %v647_v7, 5  ;;  %v1298_v10 = vrot.slane %v3206_v57, 5  ;;  %v1301_v32 = vrot.slane %v3221_v12, 5  ;;  %v2338_v7 = vld [vmem:[%s2897_s15 + $0x54] sm:$0xf] }
  0x79   : > { %v644_v9 = vor.u32 %v643_v17, %v639_v61  ;;  %v816_v23 = vshrl.u32 %v2328_v14, 16  ;;  %v1640_v3 = vpack.c.b16 %v1631_v18, %v1630_v50  ;;  %v819_v25 = vshll.u32 %v2328_v14, 16 }
  0x7a   : > { %v640_v24 = vsel %vm2970_vm5, %v635_v21, %v639_v61  ;;  %v825_v28 = vshll.u32 %v3149_v58, 16  ;;  %v1555_v29 = vpack.c.b16 %v1541_v45, %v1540_v1  ;;  %v1300_v34 = vrot.slane %v1298_v10, 4 }
  0x7b   : > { %v645_v30 = vrot.slane %v644_v9, 4  ;;  %v1382_v31 = vunpack.c.l.b16 %v640_v24  ;;  %1651 = vrot.lane.b32.xlu2 %v1640_v3, %s3860_s8  ;;  %v1299_v39 = vsel %vm2908_vm2, %v2387_v13, %v1298_v10  ;;  %v818_v27 = vrot.slane %v816_v23, 4 }
  0x7c   : > { %v821_v11 = vrot.slane %v819_v25, 5  ;;  %v827_v41 = vrot.slane %v825_v28, 5  ;;  %v1302_v1 = vsel %vm2908_vm2, %v1300_v34, %v1301_v32  ;;  %v829_v44 = vshrl.u32 %v3149_v58, 16  ;;  %v466_v25 = vld [vmem:[%s2897_s15 + $0x3c] sm:$0xf] }
  0x7d   : > { %v650_v43 = vsel %vm2970_vm5, %v645_v30, %v649_v22  ;;  %v835_v45 = vshll.u32 %v3158_v8, 16  ;;  %v3254_v47 = vpack.c.b16 %v1551_v63, %v1550_v4  ;;  %v2321_v26 = vrot.slane %v678_v38, 9  ;;  %v3261_v8 = vld [vmem:[%s3235_s20 + $0x4] sm:$0xf] }
  0x7e   : > { %1446 = vrot.lane.b32.xlu1 %v1432_v20, %s3864_s0  ;;  %1484 = vrot.lane.b32.xlu0 %v2526_v2, %s3866_s7  ;;  %v1383_v36 = vunpack.c.l.b16 %v650_v43  ;;  %v822_v48 = vor.u32 %v821_v11, %v818_v27  ;;  %v1661_v33 = vunpack.c.l.b16 %v1299_v39  ;;  %v1662_v51 = vunpack.c.l.b16 %v1302_v1  ;;  %v3295_v11 = vld [vmem:[%s2897_s15 + $0x40] sm:$0xf] }
  0x7f   : > { %v831_v52 = vrot.slane %v829_v44, 4  ;;  %v733_v58 = vrot.slane %v3243_v42, 5  ;;  %v837_v20 = vrot.slane %v835_v45, 5  ;;  %v960_v54 = vshrl.u32 %v781_v46, 16  ;;  %v3299_v44 = vld [vmem:[%s2897_s15 + $0x44] sm:$0x1] }
  0x80   : > { %v1392_v53 = vpack.c.b16 %v1383_v36, %v1382_v31  ;;  %v823_v19 = vrot.slane %v822_v48, 4  ;;  %v736_v59 = vrot.slane %v3257_v49, 5  ;;  %v963_v61 = vshll.u32 %v781_v46, 16  ;;  %v2534_v46 = vld [vmem:[%s2897_s15 + $0x24] sm:$0xff] }
  0x81   : > { %v832_v55 = vor.u32 %v831_v52, %v827_v41  ;;  %v3265_v40 = vsel %vm2908_vm2, %v2321_v26, %v733_v58  ;;  %v735_v15 = vrot.slane %v733_v58, 4  ;;  %v962_v4 = vrot.slane %v960_v54, 4  ;;  %v2364_v54 = vld [vmem:[%s2897_s15 + $0x24] sm:$0xf] }
  0x82   : > { %v828_v0 = vsel %vm2970_vm5, %v823_v19, %v827_v41  ;;  %v969_v6 = vshll.u32 %v3261_v8, 16  ;;  %v3276_v14 = vpack.c.b16 %v1662_v51, %v1661_v33  ;;  %v1416_v50 = vunpack.c.l.b16 %v3265_v40 }
  0x83   : > { %v833_v16 = vrot.slane %v832_v55, 4  ;;  %v965_v63 = vrot.slane %v963_v61, 5  ;;  %1406 = vrot.lane.b32.xlu2 %v1392_v53, %s3862_s10  ;;  %v1500_v17 = vunpack.c.l.b16 %v828_v0  ;;  %v973_v21 = vshrl.u32 %v3261_v8, 16 }
  0x84   : > { %v971_v18 = vrot.slane %v969_v6, 5  ;;  %v979_v22 = vshll.u32 %v3269_v60, 16  ;;  %v936_v10 = vshrl.u32 %v2338_v7, 16  ;;  %v939_v32 = vshll.u32 %v2338_v7, 16 }
  0x85   : > { %v838_v13 = vsel %vm2970_vm5, %v833_v16, %v837_v20  ;;  %v966_v9 = vor.u32 %v965_v63, %v962_v4  ;;  %v3288_v2 = vsel %vm2908_vm2, %v735_v15, %v736_v59  ;;  %v975_v3 = vrot.slane %v973_v21, 4 }
  0x86   : > { %1564 = vrot.lane.b32.xlu1 %v1555_v29, %s3867_s29  ;;  %1494 = vrot.lane.b32.xlu0 %v2531_v56, %s3866_s7  ;;  %v1501_v23 = vunpack.c.l.b16 %v838_v13  ;;  %v981_v24 = vrot.slane %v979_v22, 5  ;;  %v938_v30 = vrot.slane %v936_v10, 4  ;;  %v941_v31 = vrot.slane %v939_v32, 5  ;;  %v2332_v13 = vld [vmem:[%s2897_s15 + $0x30] sm:$0xf] }
  0x87   : > { %v967_v28 = vrot.slane %v966_v9, 4  ;;  %v945_v34 = vshll.u32 %v3188_v35, 16  ;;  %v976_v39 = vor.u32 %v975_v3, %v971_v18  ;;  %v949_v29 = vshrl.u32 %v3188_v35, 16 }
  0x88   : > { %v1515_v38 = vpack.c.b16 %v1501_v23, %v1500_v17  ;;  %v955_v27 = vshll.u32 %v3191_v37, 16  ;;  %v1417_v41 = vunpack.c.l.b16 %v3288_v2  ;;  %v942_v43 = vor.u32 %v941_v31, %v938_v30  ;;  %v3322_v2 = vld [vmem:[%s3235_s20] sm:$0xff]  ;;  %v3325_v30 = vpop.permute.xlu2 %1606 }
  0x89   : > { %v947_v1 = vrot.slane %v945_v34, 5  ;;  %v604_v45 = vshrl.u32 %v466_v25, 16  ;;  %v972_v36 = vsel %vm2970_vm5, %v967_v28, %v971_v18  ;;  %v977_v48 = vrot.slane %v976_v39, 4  ;;  %v3333_v39 = vld [vmem:[%s2897_s15 + $0x38] sm:$0x1] }
  0x8a   : > { %v951_v26 = vrot.slane %v949_v29, 4  ;;  %v957_v33 = vrot.slane %v955_v27, 5  ;;  %v943_v35 = vrot.slane %v942_v43, 4  ;;  %v607_v37 = vshll.u32 %v466_v25, 16 }
  0x8b   : > { %v606_v51 = vrot.slane %v604_v45, 4  ;;  %v613_v52 = vshll.u32 %v3295_v11, 16  ;;  %1524 = vrot.lane.b32.xlu2 %v1515_v38, %s3868_s16  ;;  %v982_v58 = vsel %vm2970_vm5, %v977_v48, %v981_v24  ;;  %v617_v19 = vshrl.u32 %v3295_v11, 16  ;;  %v3330_v38 = vld [vmem:[%s2897_s15 + $0x34] sm:$0xf] }
  0x8c   : > { %v952_v53 = vor.u32 %v951_v26, %v947_v1  ;;  %v623_v20 = vshll.u32 %v3299_v44, 16  ;;  %v1512_v55 = vunpack.c.l.b16 %v972_v36  ;;  %v948_v59 = vsel %vm2970_vm5, %v943_v35, %v947_v1 }
  0x8d   : > { %v609_v61 = vrot.slane %v607_v37, 5  ;;  %v615_v56 = vrot.slane %v613_v52, 5  ;;  %v1513_v0 = vunpack.c.l.b16 %v982_v58  ;;  %v1510_v4 = vunpack.c.l.b16 %v948_v59 }
  0x8e   : > { %1574 = vrot.lane.b32.xlu1 %v3254_v47, %s3867_s29  ;;  %1608 = vrot.lane.b32.xlu0 %v2534_v46, %s3861_s9  ;;  %v953_v15 = vrot.slane %v952_v53, 4  ;;  %v619_v6 = vrot.slane %v617_v19, 4  ;;  %v625_v16 = vrot.slane %v623_v20, 5  ;;  %v1118_v63 = vshrl.u32 %v2364_v54, 16 }
  0x8f   : > { %v610_v7 = vor.u32 %v609_v61, %v606_v51  ;;  %v1121_v17 = vshll.u32 %v2364_v54, 16  ;;  %v1127_v22 = vshll.u32 %v3206_v57, 16  ;;  %v1131_v47 = vshrl.u32 %v3206_v57, 16 }
  0x90   : > { %v958_v18 = vsel %vm2970_vm5, %v953_v15, %v957_v33  ;;  %v620_v21 = vor.u32 %v619_v6, %v615_v56  ;;  %v1120_v32 = vrot.slane %v1118_v63, 4  ;;  %v1137_v28 = vshll.u32 %v3221_v12, 16  ;;  %v462_v12 = vld [vmem:[%s2897_s15 + $0x24] sm:$0xf] }
  0x91   : > { %v1511_v9 = vunpack.c.l.b16 %v958_v18  ;;  %v611_v10 = vrot.slane %v610_v7, 4  ;;  %v1123_v23 = vrot.slane %v1121_v17, 5  ;;  %v1129_v24 = vrot.slane %v1127_v22, 5 }
  0x92   : > { %v621_v3 = vrot.slane %v620_v21, 4  ;;  %v1133_v25 = vrot.slane %v1131_v47, 4  ;;  %v1429_v31 = vpack.c.b16 %v1417_v41, %v1416_v50  ;;  %v864_v29 = vshrl.u32 %v2332_v13, 16  ;;  %v3361_v47 = vld [vmem:[%s2897_s15 + $0x4c] sm:$0xf] }
  0x93   : > { %v1520_v57 = vpack.c.b16 %v1511_v9, %v1510_v4  ;;  %v1124_v34 = vor.u32 %v1123_v23, %v1120_v32  ;;  %v3335_v27 = vpack.c.b16 %v1513_v0, %v1512_v55  ;;  %v616_v43 = vsel %vm2970_vm5, %v611_v10, %v615_v56  ;;  %v2336_v4 = vld [vmem:[%s2897_s15 + $0x48] sm:$0xf] }
  0x94   : > { %v1134_v1 = vor.u32 %v1133_v25, %v1129_v24  ;;  %v1139_v45 = vrot.slane %v1137_v28, 5  ;;  %v626_v40 = vsel %vm2970_vm5, %v621_v3, %v625_v16  ;;  %v866_v41 = vrot.slane %v864_v29, 4  ;;  %v3378_v28 = vld [vmem:[%s2897_s15 + $0x50] sm:$0x1] }
  0x95   : > { %1534 = vrot.lane.b32.xlu2 %v1520_v57, %s3868_s16  ;;  %v1125_v50 = vrot.slane %v1124_v34, 4  ;;  %v867_v46 = vshll.u32 %v2332_v13, 16  ;;  %v873_v48 = vshll.u32 %v3330_v38, 16  ;;  %v877_v26 = vshrl.u32 %v3330_v38, 16  ;;  %v3363_v13 = vpop.permute.xlu2 %1486 }
  0x96   : > { %1682 = vrot.lane.b32.xlu1 %v3276_v14, %s3863_s14  ;;  %1618 = vrot.lane.b32.xlu0 %v3322_v2, %s3861_s9  ;;  %v1135_v36 = vrot.slane %v1134_v1, 4  ;;  %v883_v33 = vshll.u32 %v3333_v39, 16  ;;  %v3350_v35 = vunpack.c.l.b16 %v616_v43  ;;  %v556_v52 = vshrl.u32 %v462_v12, 16 }
  0x97   : > { %v1130_v51 = vsel %vm2970_vm5, %v1125_v50, %v1129_v24  ;;  %v869_v37 = vrot.slane %v867_v46, 5  ;;  %v875_v53 = vrot.slane %v873_v48, 5  ;;  %v879_v19 = vrot.slane %v877_v26, 4  ;;  %v990_v24 = vld [vmem:[%s3235_s20] sm:$0xe] }
  0x98   : > { %v1140_v14 = vsel %vm2970_vm5, %v1135_v36, %v1139_v45  ;;  %v1624_v58 = vunpack.c.l.b16 %v1130_v51  ;;  %v885_v55 = vrot.slane %v883_v33, 5  ;;  %v558_v59 = vrot.slane %v556_v52, 4  ;;  %v1844_v46 = vld [vmem:[%s3869_s3 + $0x10] sm:$0x3] }
  0x99   : > { %v1625_v20 = vunpack.c.l.b16 %v1140_v14  ;;  %v870_v54 = vor.u32 %v869_v37, %v866_v41  ;;  %v880_v61 = vor.u32 %v879_v19, %v875_v53  ;;  %v559_v56 = vshll.u32 %v462_v12, 16  ;;  %v2528_v36 = vld [vmem:[%s2897_s15 + $0x30] sm:$0xff] }
  0x9a   : > { %v565_v0 = vshll.u32 %v3243_v42, 16  ;;  %v569_v15 = vshrl.u32 %v3243_v42, 16  ;;  %v1381_v6 = vunpack.c.l.b16 %v626_v40  ;;  %v575_v63 = vshll.u32 %v3257_v49, 16  ;;  %v3371_v49 = vpop.permute.xlu1 %1482 }
  0x9b   : > { %v1637_v7 = vpack.c.b16 %v1625_v20, %v1624_v58  ;;  %v871_v16 = vrot.slane %v870_v54, 4  ;;  %v881_v17 = vrot.slane %v880_v61, 4  ;;  %v561_v18 = vrot.slane %v559_v56, 5  ;;  %v2368_v54 = vld [vmem:[%s2897_s15 + $0x3c] sm:$0xf] }
  0x9c   : > { %v567_v21 = vrot.slane %v565_v0, 5  ;;  %v571_v22 = vrot.slane %v569_v15, 4  ;;  %v912_v9 = vshrl.u32 %v2336_v4, 16  ;;  %v577_v3 = vrot.slane %v575_v63, 5 }
  0x9d   : > { %1645 = vrot.lane.b32.xlu2 %v1637_v7, %s3860_s8  ;;  %v876_v42 = vsel %vm2970_vm5, %v871_v16, %v875_v53  ;;  %v886_v10 = vsel %vm2970_vm5, %v881_v17, %v885_v55  ;;  %v562_v32 = vor.u32 %v561_v18, %v558_v59  ;;  %v1391_v25 = vpack.c.b16 %v1381_v6, %v3350_v35  ;;  %v3416_v16 = vld [vmem:[%s2897_s15 + $0x44] sm:$0x1]  ;;  %v680_v18 = vld [vmem:[%s2897_s15 + $0x3c] sm:$0xe] }
  0x9e   : > { %1440 = vrot.lane.b32.xlu1 %v1429_v31, %s3864_s0  ;;  %1655 = vrot.lane.b32.xlu0 %v3335_v27, %s3860_s8  ;;  %v572_v23 = vor.u32 %v571_v22, %v567_v21  ;;  %v914_v57 = vrot.slane %v912_v9, 4  ;;  %v915_v34 = vshll.u32 %v2336_v4, 16  ;;  %v921_v31 = vshll.u32 %v3361_v47, 16  ;;  %v3408_v4 = vld [vmem:[%s2897_s15 + $0x40] sm:$0xf] }
  0x9f   : > { %v3381_v29 = vunpack.c.l.b16 %v876_v42  ;;  %v563_v43 = vrot.slane %v562_v32, 4  ;;  %v925_v45 = vshrl.u32 %v3361_v47, 16  ;;  %v3384_v12 = vunpack.c.l.b16 %v886_v10  ;;  %v2541_v32 = vld [vmem:[%s3869_s3 + $0x8] sm:$0xff] }
  0xa0   : > { %v573_v1 = vrot.slane %v572_v23, 4  ;;  %v917_v40 = vrot.slane %v915_v34, 5  ;;  %v3386_v50 = vrot.slane %v921_v31, 5  ;;  %v2361_v41 = vrot.slane %v990_v24, 9 }
  0xa1   : > { %v568_v48 = vsel %vm2970_vm5, %v563_v43, %v567_v21  ;;  %v927_v33 = vrot.slane %v925_v45, 4  ;;  %v931_v35 = vshll.u32 %v3378_v28, 16  ;;  %v1066_v58 = vrot.slane %v3261_v8, 5 }
  0xa2   : > { %v578_v26 = vsel %vm2970_vm5, %v573_v1, %v577_v3  ;;  %v1376_v37 = vunpack.c.l.b16 %v568_v48  ;;  %v918_v14 = vor.u32 %v917_v40, %v914_v57  ;;  %v1069_v19 = vrot.slane %v3269_v60, 5  ;;  %v3410_v60 = vpop.permute.xlu2 %1562 }
  0xa3   : > { %v3397_v51 = vpop.permute.xlu0 %1434  ;;  %v1377_v52 = vunpack.c.l.b16 %v578_v26  ;;  %v928_v53 = vor.u32 %v927_v33, %v3386_v50  ;;  %v1854_v20 = vunpack.c.l.b16 %v1844_v46  ;;  %v1067_v61 = vsel %vm2908_vm2, %v2361_v41, %v1066_v58  ;;  %v2540_v26 = vld [vmem:[%s3869_s3] sm:$0xff]  ;;  %v2372_v33 = vld [vmem:[%s2897_s15 + $0x54] sm:$0xf]  ;;  %s3546_s3 = scalar_lea.vmem %s3827_s2, %s2313_s1 }
  0xa4   : > { %v919_v59 = vrot.slane %v918_v14, 4  ;;  %v1068_v56 = vrot.slane %v1066_v58, 4  ;;  %v933_v0 = vrot.slane %v931_v35, 5  ;;  %v1552_v7 = vunpack.c.l.b16 %v1067_v61 }
  0xa5   : > { %v1389_v55 = vpack.c.b16 %v1377_v52, %v1376_v37  ;;  %v929_v8 = vrot.slane %v928_v53, 4  ;;  %v1857_v15 = vpack.c.b16 %v1854_v20, %v1854_v20  ;;  %v1166_v63 = vshrl.u32 %v2368_v54, 16  ;;  %v3419_v21 = vpop.permute.xlu1 %1680  ;;  %v3451_v52 = vld [vmem:[%s2897_s15 + $0x58] sm:$0xf]  ;;  %v2517_v53 = vld [vmem:[%s2897_s15] sm:$0xff] }
  0xa6   : > { %1488 = vrot.lane.b32.xlu1 %v2528_v36, %s3866_s7  ;;  %1404 = vrot.lane.b32.xlu0 %v1391_v25, %s3862_s10  ;;  %v1070_v6 = vsel %vm2908_vm2, %v1068_v56, %v1069_v19  ;;  %v1169_v17 = vshll.u32 %v2368_v54, 16  ;;  %v1517_v22 = vpack.c.b16 %v3384_v12, %v3381_v29  ;;  %v924_v10 = vsel %vm2970_vm5, %v919_v59, %v3386_v50  ;;  %v2530_v25 = vld [vmem:[%s2897_s15 + $0x48] sm:$0xff] }
  0xa7   : > { %1400 = vrot.lane.b32.xlu2 %v1389_v55, %s3862_s10  ;;  %v1553_v42 = vunpack.c.l.b16 %v1070_v6  ;;  %v1879_v9 = vsel %vm1877_vm6, %v1857_v15, 0  ;;  %v1168_v23 = vrot.slane %v1166_v63, 4  ;;  %v1175_v24 = vshll.u32 %v3408_v4, 16  ;;  %v3461_v55 = vld [vmem:[%s2897_s15 + $0x5c] sm:$0x1] }
  0xa8   : > { %1886 = vmatpush.bf16.msra.mxu0 %v1879_v9  ;;  %v1171_v3 = vrot.slane %v1169_v17, 5  ;;  %2542 = vmatpush.bf16.msra.mxu1 %v1879_v9  ;;  %v934_v57 = vsel %vm2970_vm5, %v929_v8, %v933_v0  ;;  %v1179_v34 = vshrl.u32 %v3408_v4, 16  ;;  %v1185_v31 = vshll.u32 %v3416_v16, 16  ;;  %v2350_v15 = vld [vmem:[%s2897_s15 + $0x30] sm:$0xe]  ;;  %v2536_v6 = vld [vmem:[%s2897_s15 + $0x3c] sm:$0xff] }
  0xa9   : > { %v2323_v29 = vrot.slane %v680_v18, 9  ;;  %2543 = vmatpush.bf16.msra.mxu2 %v1879_v9  ;;  %2544 = vmatpush.bf16.msra.mxu3 %v1879_v9  ;;  %v3438_v1 = vpack.c.b16 %v1553_v42, %v1552_v7  ;;  %v1177_v12 = vrot.slane %v1175_v24, 5  ;;  %v747_v40 = vrot.slane %v3295_v11, 5 }
  0xaa   : > { %v1172_v45 = vor.u32 %v1171_v3, %v1168_v23  ;;  %v1181_v50 = vrot.slane %v1179_v34, 4  ;;  %v750_v41 = vrot.slane %v3299_v44, 5  ;;  %v1508_v11 = vunpack.c.l.b16 %v924_v10 }
  0xab   : > { %v3436_v43 = vpop.permute.xlu0 %1438  ;;  %v748_v36 = vsel %vm2908_vm2, %v2323_v29, %v747_v40  ;;  %v749_v48 = vrot.slane %v747_v40, 4  ;;  %v1509_v44 = vunpack.c.l.b16 %v934_v57  ;;  %v1187_v37 = vrot.slane %v1185_v31, 5 }
  0xac   : > { %1887 = vmatpush.bf16.msra.mxu0 %v2541_v32  ;;  %v1173_v46 = vrot.slane %v1172_v45, 4  ;;  %2545 = vmatpush.bf16.msra.mxu1 %v2541_v32  ;;  %v1182_v35 = vor.u32 %v1181_v50, %v1177_v12  ;;  %v1420_v58 = vunpack.c.l.b16 %v748_v36  ;;  %v1214_v59 = vshrl.u32 %v2372_v33, 16  ;;  %v2385_v45 = vld [vmem:[%s2897_s15 + $0x54] sm:$0xe] }
  0xad   : > { %v751_v14 = vsel %vm2908_vm2, %v749_v48, %v750_v41  ;;  %2546 = vmatpush.bf16.msra.mxu2 %v2541_v32  ;;  %2547 = vmatpush.bf16.msra.mxu3 %v2541_v32  ;;  %v1217_v56 = vshll.u32 %v2372_v33, 16  ;;  %v1223_v8 = vshll.u32 %v3451_v52, 16  ;;  %v1227_v0 = vshrl.u32 %v3451_v52, 16 }
  0xae   : > { %1492 = vrot.lane.b32.xlu1 %v2530_v25, %s3866_s7  ;;  %1528 = vrot.lane.b32.xlu0 %v1517_v22, %s3868_s16  ;;  %v1178_v19 = vsel %vm2970_vm5, %v1173_v46, %v1177_v12  ;;  %v1183_v20 = vrot.slane %v1182_v35, 4  ;;  %v1421_v54 = vunpack.c.l.b16 %v751_v14  ;;  %v1519_v63 = vpack.c.b16 %v1509_v44, %v1508_v11  ;;  %v2538_v35 = vld [vmem:[%s2897_s15 + $0x54] sm:$0xff] }
  0xaf   : > { %1692 = vrot.lane.b32.xlu2 %v3438_v1, %s3863_s14  ;;  %v1216_v18 = vrot.slane %v1214_v59, 4  ;;  %v1628_v42 = vunpack.c.l.b16 %v1178_v19  ;;  %v1219_v10 = vrot.slane %v1217_v56, 5  ;;  %v1225_v32 = vrot.slane %v1223_v8, 5  ;;  %v3500_v19 = vld [vmem:[%s2897_s15 + $0x5c] sm:$0x1] }
  0xb0   : > { %v3463_v61 = vpop.permute.xlu2 %1398  ;;  %1888 = vmatpush.bf16.msra.mxu0 %v2540_v26  ;;  %2548 = vmatpush.bf16.msra.mxu1 %v2540_v26  ;;  %v1523_v7 = vpop.permute.xlu1 %1522  ;;  %v1188_v17 = vsel %vm2970_vm5, %v1183_v20, %v1187_v37  ;;  %v1431_v9 = vpack.c.b16 %v1421_v54, %v1420_v58  ;;  %v1229_v3 = vrot.slane %v1227_v0, 4  ;;  %v1233_v24 = vshll.u32 %v3461_v55, 16  ;;  %v682_v20 = vld [vmem:[%s2897_s15 + $0x54] sm:$0xe]  ;;  %v2352_v56 = vld [vmem:[%s2897_s15 + $0x48] sm:$0xe] }
  0xb1   : > { %2549 = vmatpush.bf16.msra.mxu2 %v2540_v26  ;;  %v2357_v25 = vrot.slane %v2350_v15, 9  ;;  %2550 = vmatpush.bf16.msra.mxu3 %v2540_v26  ;;  %v1629_v34 = vunpack.c.l.b16 %v1188_v17  ;;  %v1220_v31 = vor.u32 %v1219_v10, %v1216_v18  ;;  %v1038_v29 = vrot.slane %v3330_v38, 5 }
  0xb2   : > { %v1230_v40 = vor.u32 %v1229_v3, %v1225_v32  ;;  %v1235_v50 = vrot.slane %v1233_v24, 5  ;;  %v1041_v41 = vrot.slane %v3333_v39, 5  ;;  %v2391_v26 = vrot.slane %v2385_v45, 9 }
  0xb3   : > { %v1395_v22 = vpop.permute.xlu0 %1394  ;;  %v1039_v38 = vsel %vm2908_vm2, %v2357_v25, %v1038_v29  ;;  %v1040_v46 = vrot.slane %v1038_v29, 4  ;;  %v1639_v33 = vpack.c.b16 %v1629_v34, %v1628_v42  ;;  %v1329_v54 = vrot.slane %v3461_v55, 5 }
  0xb4   : > { %v1699_v23 = vsel %vm1696_vm7, %v2517_v53, %v1395_v22  ;;  %v1231_v36 = vrot.slane %v1230_v40, 4  ;;  %v1544_v48 = vunpack.c.l.b16 %v1039_v38  ;;  %v1326_v53 = vrot.slane %v3451_v52, 5 }
  0xb5   : > { %v1723_v57 = vsel %vm1721_vm8, %v1699_v23, %v3397_v51  ;;  %v1221_v51 = vrot.slane %v1220_v31, 4  ;;  %v1042_v44 = vsel %vm2908_vm2, %v1040_v46, %v1041_v41  ;;  %v2325_v18 = vrot.slane %v682_v20, 9 }
  0xb6   : > { %1612 = vrot.lane.b32.xlu1 %v2536_v6, %s3861_s9  ;;  %1532 = vrot.lane.b32.xlu0 %v1519_v63, %s3868_s16  ;;  %v1740_v12 = vsel %vm1738_vm9, %v1723_v57, %v3371_v49  ;;  %v3486_v49 = vld [vmem:[%s2897_s15 + $0x58] sm:$0xf]  ;;  %v1236_v14 = vsel %vm2970_vm5, %v1231_v36, %v1235_v50  ;;  %v1545_v58 = vunpack.c.l.b16 %v1042_v44  ;;  %v1327_v6 = vsel %vm2908_vm2, %v2391_v26, %v1326_v53 }
  0xb7   : > { %1444 = vrot.lane.b32.xlu2 %v1431_v9, %s3864_s0  ;;  %v1757_v39 = vsel %vm1755_vm10, %v1740_v12, %v1523_v7  ;;  %v1226_v37 = vsel %vm2970_vm5, %v1221_v51, %v1225_v32  ;;  %v761_v59 = vrot.slane %v3486_v49, 5  ;;  %v1328_v52 = vrot.slane %v1326_v53, 4  ;;  %v2383_v7 = vld [vmem:[%s2897_s15 + $0x3c] sm:$0xe]  ;;  %v1085_v53 = vld [vmem:[%s3546_s3 + $0x4] sm:$0xf] }
  0xb8   : > { %v3506_v8 = vpop.permute.xlu1 %1402  ;;  %v1774_v0 = vsel %vm1772_vm11, %v1757_v39, %v3410_v60  ;;  %v1557_v15 = vpack.c.b16 %v1545_v58, %v1544_v48  ;;  %v1632_v63 = vunpack.c.l.b16 %v1226_v37  ;;  %v1633_v17 = vunpack.c.l.b16 %v1236_v14 }
  0xb9   : > { %v3489_v11 = vpop.permute.xlu2 %1490  ;;  %v764_v22 = vrot.slane %v3500_v19, 5  ;;  %v1330_v55 = vsel %vm2908_vm2, %v1328_v52, %v1329_v54  ;;  %v1669_v42 = vunpack.c.l.b16 %v1327_v6  ;;  %v2359_v60 = vrot.slane %v2352_v56, 9 }
  0xba   : > { %v1052_v9 = vrot.slane %v3361_v47, 5  ;;  %v1670_v10 = vunpack.c.l.b16 %v1330_v55  ;;  %v763_v32 = vrot.slane %v761_v59, 4  ;;  %v1055_v23 = vrot.slane %v3378_v28, 5  ;;  %v470_v28 = vld [vmem:[%s2897_s15 + $0x54] sm:$0xf] }
  0xbb   : > { %v2389_v3 = vrot.slane %v2383_v7, 9  ;;  %v1791_v24 = vsel %vm1789_vm12, %v1774_v0, %v3325_v30  ;;  %v1312_v31 = vrot.slane %v3408_v4, 5  ;;  %v762_v29 = vsel %vm2908_vm2, %v2325_v18, %v761_v59  ;;  %v1084_v18 = vld [vmem:[%s3546_s3] sm:$0xf] }
  0xbc   : > { %v1053_v57 = vsel %vm2908_vm2, %v2359_v60, %v1052_v9  ;;  %v1054_v34 = vrot.slane %v1052_v9, 4  ;;  %v1315_v12 = vrot.slane %v3416_v16, 5  ;;  %v1641_v40 = vpack.c.b16 %v1633_v17, %v1632_v63  ;;  %v1092_v63 = vld [vmem:[%s3546_s3 + $0x8] sm:$0x1] }
  0xbd   : > { %v1548_v45 = vunpack.c.l.b16 %v1053_v57  ;;  %v1678_v50 = vpack.c.b16 %v1670_v10, %v1669_v42  ;;  %v765_v51 = vsel %vm2908_vm2, %v763_v32, %v764_v22  ;;  %v1313_v16 = vsel %vm2908_vm2, %v2389_v3, %v1312_v31  ;;  %v1267_v22 = vld [vmem:[%s3546_s3] sm:$0xe]  ;;  %v2519_v3 = vld [vmem:[%s2897_s15 + $0x18] sm:$0xff] }
  0xbe   : > { %1616 = vrot.lane.b32.xlu1 %v2538_v35, %s3861_s9  ;;  %1649 = vrot.lane.b32.xlu0 %v1639_v33, %s3860_s8  ;;  %v1056_v4 = vsel %vm2908_vm2, %v1054_v34, %v1055_v23  ;;  %v1314_v46 = vrot.slane %v1312_v31, 4  ;;  %v1424_v36 = vunpack.c.l.b16 %v762_v29  ;;  %v655_v33 = vshll.u32 %v470_v28, 16 }
  0xbf   : > { %1568 = vrot.lane.b32.xlu2 %v1557_v15, %s3867_s29  ;;  %v1549_v38 = vunpack.c.l.b16 %v1056_v4  ;;  %v661_v39 = vshll.u32 %v3486_v49, 16  ;;  %v1425_v35 = vunpack.c.l.b16 %v765_v51  ;;  %v1665_v37 = vunpack.c.l.b16 %v1313_v16  ;;  %v2539_v4 = vld [vmem:[%s3546_s3] sm:$0xff]  ;;  %s2316_s3 = sshll.u32 %s2887_s19, 5  ;;  %s2501_s19 = sshll.u32 %s2753_s25, 1 }
  0xc0   : > { %v1644_v25 = vpop.permute.xlu0 %1643  ;;  %v1316_v26 = vsel %vm2908_vm2, %v1314_v46, %v1315_v12  ;;  %v657_v20 = vrot.slane %v655_v33, 5  ;;  %v665_v59 = vshrl.u32 %v3486_v49, 16  ;;  %v671_v0 = vshll.u32 %v3500_v19, 16 }
  0xc1   : > { %v1808_v47 = vsel %vm1806_vm13, %v1791_v24, %v1644_v25  ;;  %v3534_v41 = vpop.permute.xlu2 %1610  ;;  %v1559_v48 = vpack.c.b16 %v1549_v38, %v1548_v45  ;;  %v1666_v14 = vunpack.c.l.b16 %v1316_v26  ;;  %v663_v54 = vrot.slane %v661_v39, 5 }
  0xc2   : > { %v1825_v30 = vsel %vm1823_vm14, %v1808_v47, %v3419_v21  ;;  %v652_v21 = vshrl.u32 %v470_v28, 16  ;;  %v667_v6 = vrot.slane %v665_v59, 4  ;;  %v1433_v52 = vpack.c.b16 %v1425_v35, %v1424_v36  ;;  %v2521_v36 = vld [vmem:[%s2897_s15 + $0x30] sm:$0xff] }
  0xc3   : > { %2493 = vmatmul.msk.bf16.vlgmr.msra.gmra.mxu0 %vm1860_vm15, %v1825_v30  ;;  %v3551_v44 = vpop.permute.xlu1 %1526  ;;  %v1676_v7 = vpack.c.b16 %v1666_v14, %v1665_v37  ;;  %v1333_v17 = vrot.slane %v1085_v53, 5  ;;  %v673_v60 = vrot.slane %v671_v0, 5  ;;  %v1238_v9 = vshrl.u32 %v1084_v18, 16 }
  0xc4   : > { %v654_v58 = vrot.slane %v652_v21, 4  ;;  %v668_v42 = vor.u32 %v667_v6, %v663_v54  ;;  %v1241_v49 = vshll.u32 %v1084_v18, 16  ;;  %v1247_v32 = vshll.u32 %v1085_v53, 16 }
  0xc5   : > { %v1251_v23 = vshrl.u32 %v1085_v53, 16  ;;  %v2392_v25 = vrot.slane %v1267_v22, 9  ;;  %v1336_v57 = vrot.slane %v1092_v63, 5  ;;  %v1335_v34 = vrot.slane %v1333_v17, 4 }
  0xc6   : > { %1653 = vrot.lane.b32.xlu0 %v1641_v40, %s3860_s8  ;;  %1690 = vrot.lane.b32.xlu1 %v1678_v50, %s3863_s14  ;;  %v658_v15 = vor.u32 %v657_v20, %v654_v58  ;;  %v669_v24 = vrot.slane %v668_v42, 4  ;;  %v1240_v29 = vrot.slane %v1238_v9, 4  ;;  %v1243_v30 = vrot.slane %v1241_v49, 5 }
  0xc7   : > { %1572 = vrot.lane.b32.xlu2 %v1559_v48, %s3867_s29  ;;  %v1249_v40 = vrot.slane %v1247_v32, 5  ;;  %v1253_v50 = vrot.slane %v1251_v23, 4  ;;  %v1334_v51 = vsel %vm2908_vm2, %v2392_v25, %v1333_v17  ;;  %v1337_v38 = vsel %vm2908_vm2, %v1335_v34, %v1336_v57  ;;  %v2518_v23 = vld [vmem:[%s2897_s15 + $0xc] sm:$0xff] }
  0xc8   : > { %v3558_v56 = vpop.permute.xlu0 %1442  ;;  %v659_v55 = vrot.slane %v658_v15, 4  ;;  %v674_v31 = vsel %vm2970_vm5, %v669_v24, %v673_v60  ;;  %v1244_v21 = vor.u32 %v1243_v30, %v1240_v29  ;;  %v1257_v26 = vshll.u32 %v1092_v63, 16  ;;  %v2523_v29 = vld [vmem:[%s2897_s15 + $0x48] sm:$0xff] }
  0xc9   : > { %v3564_v10 = vpop.permute.xlu2 %1614  ;;  %v1385_v28 = vunpack.c.l.b16 %v674_v31  ;;  %v1254_v48 = vor.u32 %v1253_v50, %v1249_v40  ;;  %v1671_v33 = vunpack.c.l.b16 %v1334_v51  ;;  %v1672_v39 = vunpack.c.l.b16 %v1337_v38 }
  0xca   : > { %v664_v19 = vsel %vm2970_vm5, %v659_v55, %v663_v54  ;;  %v1245_v14 = vrot.slane %v1244_v21, 4  ;;  %v1259_v53 = vrot.slane %v1257_v26, 5 }
  0xcb   : > { %v1384_v47 = vunpack.c.l.b16 %v664_v19  ;;  %v1255_v58 = vrot.slane %v1254_v48, 4  ;;  %v1679_v54 = vpack.c.b16 %v1672_v39, %v1671_v33 }
  0xcd   : > { %v1393_v16 = vpack.c.b16 %v1385_v28, %v1384_v47 }
  0xce   : > { %1448 = vrot.lane.b32.xlu0 %v1433_v52, %s3864_s0  ;;  %1496 = vrot.lane.b32.xlu1 %v3322_v2, %s3866_s7  ;;  %v1705_v2 = vsel %vm1696_vm7, %v2519_v3, %v3463_v61  ;;  %s2315_s0 = sshll.u32 %s3889_s18, 1  ;;  %s2082_s7 = sadd.s32 %s2749_s24, %s2501_s19 }
  0xcf   : > { %1686 = vrot.lane.b32.xlu2 %v1676_v7, %s3863_s14  ;;  %v1727_v46 = vsel %vm1721_vm8, %v1705_v2, %v3436_v43  ;;  %v1711_v43 = vsel %vm1696_vm7, %v2521_v36, %v3506_v8  ;;  %v1260_v8 = vsel %vm2970_vm5, %v1255_v58, %v1259_v53  ;;  %s2085_s1 = scalar_lea.hbm %s3830_s5, %s2082_s7  ;;  %s2100_s20 = scalar_lea.hbm %s3831_s6, %s2082_s7 }
  0xd0   : > { %v1531_v45 = vpop.permute.xlu1 %1530  ;;  %v1567_v12 = vpop.permute.xlu0 %1566  ;;  %v1744_v5 = vsel %vm1738_vm9, %v1727_v46, %v3363_v13  ;;  %v1731_v59 = vsel %vm1721_vm8, %v1711_v43, %v3558_v56  ;;  %v1250_v13 = vsel %vm2970_vm5, %v1245_v14, %v1249_v40  ;;  %v1635_v56 = vunpack.c.l.b16 %v1260_v8  ;;  %s3756_s24 = sshll.u32 %s2085_s1, 4  ;;  %s2090_s24 = int_to_ptr.hbm [resolvable:$true] %s3756_s24 }
  0xd1   : > { %v1748_v15 = vsel %vm1738_vm9, %v1731_v59, %v3489_v11  ;;  %v1634_v6 = vunpack.c.l.b16 %v1250_v13 }
  0xd2   : > { %v1765_v62 = vsel %vm1755_vm10, %v1748_v15, %v1531_v45 }
  0xd3   : > { %v1642_v11 = vpack.c.b16 %v1635_v56, %v1634_v6 }
  0xd5   : > { %v1652_v61 = vpop.permute.xlu2 %1651 }
  0xd6   : > { %1576 = vrot.lane.b32.xlu0 %v3438_v1, %s3867_s29  ;;  %1620 = vrot.lane.b32.xlu1 %v2539_v4, %s3861_s9  ;;  %v1761_v1 = vsel %vm1755_vm10, %v1744_v5, %v3551_v44 }
  0xd7   : > { %1408 = vrot.lane.b32.xlu2 %v1393_v16, %s3862_s10  ;;  %v1778_v20 = vsel %vm1772_vm11, %v1761_v1, %v1567_v12  ;;  %s447_s10 = sadd.s32 %s2316_s3, %s2315_s0 }
  0xd8   : > { %v1648_v35 = vpop.permute.xlu1 %1647  ;;  %v1571_v37 = vpop.permute.xlu0 %1570  ;;  %v1795_v0 = vsel %vm1789_vm12, %v1778_v20, %v3534_v41 }
  0xd9   : > { %v1812_v52 = vsel %vm1806_vm13, %v1795_v0, %v1648_v35  ;;  %v1782_v17 = vsel %vm1772_vm11, %v1765_v62, %v1571_v37  ;;  %v2520_v37 = vld [vmem:[%s2897_s15 + $0x24] sm:$0xff] }
  0xda   : > { %v1799_v18 = vsel %vm1789_vm12, %v1782_v17, %v3564_v10 }
  0xdb   : > { %v1816_v22 = vsel %vm1806_vm13, %v1799_v18, %v1652_v61 }
  0xdd   : > { %v1407_v44 = vpop.permute.xlu2 %1406 }
  0xde   : > { %1694 = vrot.lane.b32.xlu0 %v1679_v54, %s3863_s14  ;;  %v1717_v30 = vsel %vm1696_vm7, %v2523_v29, %v1407_v44  ;;  %v2522_v54 = vld [vmem:[%s2897_s15 + $0x3c] sm:$0xff]  ;;  %s2317_s14 = sshll.u32 %s447_s10, 2 }
  0xdf   : > { %1536 = vrot.lane.b32.xlu2 %v3335_v27, %s3868_s16  ;;  %s3668_s18 = scalar_lea.vmem %s3829_s4, %s2317_s14  ;;  %s2659_s16 = scalar_lea.hbm %s3830_s5, 4 }
  0xe0   : > { %v1397_v7 = vpop.permute.xlu1 %1396  ;;  %v1685_v63 = vpop.permute.xlu0 %1684 }
  0xe1   : > { %v1829_v41 = vsel %vm1823_vm14, %v1812_v52, %v1685_v63  ;;  %v1702_v19 = vsel %vm1696_vm7, %v2518_v23, %v1397_v7 }
  0xe2   : > { %2495 = vmatmul.msk.bf16.vlgmr.msra.gmra.mxu1 %vm1860_vm15, %v1829_v41 }
  0xe5   : > { %v1525_v27 = vpop.permute.xlu2 %1524 }
  0xe7   : > { %1657 = vrot.lane.b32.xlu2 %v1642_v11, %s3860_s8  ;;  %s3761_s8 = sshll.u32 %s2100_s20, 4  ;;  %s2105_s8 = int_to_ptr.hbm [resolvable:$true] %s3761_s8 }
  0xe8   : > { %v1689_v55 = vpop.permute.xlu1 %1688  ;;  %v1437_v42 = vpop.permute.xlu0 %1436 }
  0xe9   : > { %v1833_v60 = vsel %vm1823_vm14, %v1816_v22, %v1689_v55  ;;  %v1725_v25 = vsel %vm1721_vm8, %v1702_v19, %v1437_v42 }
  0xea   : > { %2497 = vmatmul.msk.bf16.vlgmr.msra.gmra.mxu2 %vm1860_vm15, %v1833_v60 }
  0xef   : > { %v1535_v9 = vpop.permute.xlu2 %1534 }
  0xf0   : > { %v1447_v49 = vpop.permute.xlu1 %1446  ;;  %v1485_v32 = vpop.permute.xlu0 %1484 }
  0xf1   : > { %v1742_v57 = vsel %vm1738_vm9, %v1725_v25, %v1485_v32  ;;  %v1735_v50 = vsel %vm1721_vm8, %v1717_v30, %v1447_v49  ;;  %v2524_v49 = vld [vmem:[%s2897_s15 + $0x54] sm:$0xff]  ;;  %s3744_s15 = sand.u32 1, %s2741_s22  }
  0xf2   : > { %v1759_v34 = vsel %vm1755_vm10, %v1742_v57, %v1525_v27  ;;  %s384_s0 = scalar_lea.vmem [#allocation2], %s3744_s15  ;;  %s390_s10 = scalar_lea.vmem [#allocation4], %s3744_s15 }
  0xf3   : > { %s3754_s3 = sshll.u32 %s384_s0, 4  ;;  %s3759_s14 = sshll.u32 %s390_s10, 4  ;;  %s2088_s3 = int_to_ptr.vmem [resolvable:$true] %s3754_s3  ;;  %s2103_s14 = int_to_ptr.vmem [resolvable:$true] %s3759_s14 }
  0xf4   : > { %s2067_s9 = scalar_lea.sflag [#allocation3], %s3744_s15 }
  0xf7   : > { %v1646_v3 = vpop.permute.xlu2 %1645 }
  0xf8   : > { %v1565_v10 = vpop.permute.xlu1 %1564  ;;  %v1495_v24 = vpop.permute.xlu0 %1494 }
  0xf9   : > { %v1776_v12 = vsel %vm1772_vm11, %v1759_v34, %v1565_v10  ;;  %v1752_v51 = vsel %vm1738_vm9, %v1735_v50, %v1495_v24 }
  0xfa   : > { %v1769_v46 = vsel %vm1755_vm10, %v1752_v51, %v1535_v9 }
 0x100   : > { %v1575_v31 = vpop.permute.xlu1 %1574  ;;  %v1609_v47 = vpop.permute.xlu0 %1608 }
 0x101   : > { %v1401_v45 = vpop.permute.xlu2 %1400  ;;  %v1793_v28 = vsel %vm1789_vm12, %v1776_v12, %v1609_v47  ;;  %v1786_v36 = vsel %vm1772_vm11, %v1769_v46, %v1575_v31 }
 0x102   : > { %v1810_v40 = vsel %vm1806_vm13, %v1793_v28, %v1646_v3  ;;  %v1708_v53 = vsel %vm1696_vm7, %v2520_v37, %v1401_v45 }
 0x108   : > { %v1683_v2 = vpop.permute.xlu1 %1682  ;;  %v1619_v4 = vpop.permute.xlu0 %1618 }
 0x109   : > { %v1827_v38 = vsel %vm1823_vm14, %v1810_v40, %v1683_v2  ;;  %v1693_v16 = vpop.permute.xlu2 %1692  ;;  %v1803_v21 = vsel %vm1789_vm12, %v1786_v36, %v1619_v4 }
 0x10a   : > { %2494 = vmatmul.msk.bf16.gmra.mxu0 %vm1860_vm15, %v1827_v38 }
 0x110   : > { %v1441_v48 = vpop.permute.xlu1 %1440  ;;  %v1656_v26 = vpop.permute.xlu0 %1655 }
 0x111   : > { %v1820_v61 = vsel %vm1806_vm13, %v1803_v21, %v1656_v26  ;;  %v1445_v33 = vpop.permute.xlu2 %1444  ;;  %v1729_v20 = vsel %vm1721_vm8, %v1708_v53, %v1441_v48 }
 0x112   : > { %v1837_v39 = vsel %vm1823_vm14, %v1820_v61, %v1693_v16 }
 0x113   : > { %2499 = vmatmul.msk.bf16.vlgmr.msra.gmra.mxu3 %vm1860_vm15, %v1837_v39 }
 0x118   : > { %v1489_v5 = vpop.permute.xlu1 %1488  ;;  %v1405_v43 = vpop.permute.xlu0 %1404 }
 0x119   : > { %v1569_v35 = vpop.permute.xlu2 %1568  ;;  %v1746_v8 = vsel %vm1738_vm9, %v1729_v20, %v1489_v5  ;;  %v1714_v15 = vsel %vm1696_vm7, %v2522_v54, %v1405_v43 }
 0x11a   : > { %v1733_v6 = vsel %vm1721_vm8, %v1714_v15, %v1445_v33 }
 0x120   : > { %v1493_v14 = vpop.permute.xlu1 %1492  ;;  %v1529_v58 = vpop.permute.xlu0 %1528 }
 0x121   : > { %v1573_v1 = vpop.permute.xlu2 %1572  ;;  %v1763_v0 = vsel %vm1755_vm10, %v1746_v8, %v1529_v58  ;;  %v1750_v62 = vsel %vm1738_vm9, %v1733_v6, %v1493_v14 }
 0x122   : > { %v1780_v44 = vsel %vm1772_vm11, %v1763_v0, %v1569_v35 }
 0x128   : > { %v1613_v59 = vpop.permute.xlu1 %1612  ;;  %v1533_v13 = vpop.permute.xlu0 %1532 }
 0x129   : > { %v1687_v56 = vpop.permute.xlu2 %1686  ;;  %v1797_v52 = vsel %vm1789_vm12, %v1780_v44, %v1613_v59  ;;  %v1767_v17 = vsel %vm1755_vm10, %v1750_v62, %v1533_v13 }
 0x12a   : > { %v1784_v18 = vsel %vm1772_vm11, %v1767_v17, %v1573_v1 }
 0x130   : > { %v1617_v7 = vpop.permute.xlu1 %1616  ;;  %v1650_v63 = vpop.permute.xlu0 %1649 }
 0x131   : > { %v1814_v41 = vsel %vm1806_vm13, %v1797_v52, %v1650_v63  ;;  %v1801_v27 = vsel %vm1789_vm12, %v1784_v18, %v1617_v7  ;;  %v1409_v60 = vpop.permute.xlu2 %1408 }
 0x132   : > { %v1831_v11 = vsel %vm1823_vm14, %v1814_v41, %v1687_v56  ;;  %v1720_v32 = vsel %vm1696_vm7, %v2524_v49, %v1409_v60 }
 0x133   : > { %2496 = vmatmul.msk.bf16.gmra.mxu1 %vm1860_vm15, %v1831_v11 }
 0x138   : > { %v1654_v22 = vpop.permute.xlu0 %1653  ;;  %v1691_v55 = vpop.permute.xlu1 %1690 }
 0x139   : > { %v1818_v42 = vsel %vm1806_vm13, %v1801_v27, %v1654_v22  ;;  %v1537_v25 = vpop.permute.xlu2 %1536 }
 0x13a   : > { %v1835_v9 = vsel %vm1823_vm14, %v1818_v42, %v1691_v55 }
 0x13b   : > { %2498 = vmatmul.msk.bf16.gmra.mxu2 %vm1860_vm15, %v1835_v9 }
 0x140   : > { %v1890_v23 = vpop.f32.mrf.mxu0  ;;  %v1449_v3 = vpop.permute.xlu0 %1448 }
 0x141   : > { %v2023_v19 = vpack.c.bf16 %v1890_v23, %v1890_v23  ;;  %v1497_v10 = vpop.permute.xlu1 %1496  ;;  %v1737_v24 = vsel %vm1721_vm8, %v1720_v32, %v1449_v3  ;;  %v1969_v34 = vmul.f32 %v1890_v23, %v1890_v23  ;;  %v1930_v31 = vsel %vm1696_vm7, %v1890_v23, 0.0  ;;  %v1658_v46 = vpop.permute.xlu2 %1657 }
 0x142   : > { %v1754_v57 = vsel %vm1738_vm9, %v1737_v24, %v1497_v10 }
 0x143   : > { %2040 = vst.msk [vmem:[%s3668_s18] sm:$0xf] %vm2039_vm0, %v2023_v19  ;;  %v1771_v45 = vsel %vm1755_vm10, %v1754_v57, %v1537_v25  ;;  %v1985_v4 = vsel %vm1696_vm7, %v1969_v34, 0.0 }
 0x148   : > { %v1892_v47 = vpop.f32.mrf.mxu0  ;;  %v1577_v29 = vpop.permute.xlu0 %1576 }
 0x149   : > { %v1931_v12 = vsel %vm1696_vm7, %v1892_v47, 0.0  ;;  %v1970_v28 = vmul.f32 %v1892_v47, %v1892_v47  ;;  %v2024_v30 = vpack.c.bf16 %v1892_v47, %v1892_v47  ;;  %v1788_v50 = vsel %vm1772_vm11, %v1771_v45, %v1577_v29  ;;  %v1621_v2 = vpop.permute.xlu1 %1620 }
 0x14a   : > { %v1932_v40 = vadd.f32 %v1931_v12, %v1930_v31  ;;  %v1805_v16 = vsel %vm1789_vm12, %v1788_v50, %v1621_v2 }
 0x14b   : > { %v1986_v51 = vsel %vm1696_vm7, %v1970_v28, 0.0  ;;  %2041 = vst.msk [vmem:[%s3668_s18 + $0x4] sm:$0xf] %vm2039_vm0, %v2024_v30  ;;  %v1822_v36 = vsel %vm1806_vm13, %v1805_v16, %v1658_v46 }
 0x14c   : > { %v1987_v38 = vadd.f32 %v1986_v51, %v1985_v4 }
 0x150   : > { %v1695_v21 = vpop.permute.xlu0 %1694 }
 0x151   : > { %v1839_v48 = vsel %vm1823_vm14, %v1822_v36, %v1695_v21 }
 0x152   : > { %2500 = vmatmul.msk.bf16.gmra.mxu3 %vm1860_vm15, %v1839_v48 }
 0x15f   : > { %v1900_v26 = vpop.f32.mrf.mxu1 }
 0x160   : > { %v2027_v61 = vpack.c.bf16 %v1900_v26, %v1900_v26  ;;  %v1973_v13 = vmul.f32 %v1900_v26, %v1900_v26  ;;  %v1937_v56 = vsel %vm1696_vm7, %v1900_v26, 0.0 }
 0x162   : > { %2044 = vst.msk [vmem:[%s3668_s18 + $0x10] sm:$0xf] %vm2039_vm0, %v2027_v61  ;;  %v1992_v62 = vsel %vm1696_vm7, %v1973_v13, 0.0 }
 0x167   : > { %v1902_v33 = vpop.f32.mrf.mxu1 }
 0x168   : > { %v2028_v39 = vpack.c.bf16 %v1902_v33, %v1902_v33  ;;  %v1974_v42 = vmul.f32 %v1902_v33, %v1902_v33  ;;  %v1939_v9 = vsel %vm1696_vm7, %v1902_v33, 0.0 }
 0x16a   : > { %2045 = vst.msk [vmem:[%s3668_s18 + $0x14] sm:$0xf] %vm2039_vm0, %v2028_v39  ;;  %v1994_v23 = vsel %vm1696_vm7, %v1974_v42, 0.0 }
 0x16d   : > { %v1910_v5 = vpop.f32.mrf.mxu2 }
 0x16e   : > { %v2031_v43 = vpack.c.bf16 %v1910_v5, %v1910_v5  ;;  %v1977_v25 = vmul.f32 %v1910_v5, %v1910_v5  ;;  %v1945_v45 = vsel %vm1696_vm7, %v1910_v5, 0.0 }
 0x170   : > { %2048 = vst.msk [vmem:[%s3668_s18 + $0x20] sm:$0xf] %vm2039_vm0, %v2031_v43 }
 0x175   : > { %v1912_v35 = vpop.f32.mrf.mxu2 }
 0x176   : > { %v2032_v37 = vpack.c.bf16 %v1912_v35, %v1912_v35  ;;  %v1978_v4 = vmul.f32 %v1912_v35, %v1912_v35 }
 0x178   : > { %2049 = vst.msk [vmem:[%s3668_s18 + $0x24] sm:$0xf] %vm2039_vm0, %v2032_v37  ;;  %v2002_v36 = vsel %vm1696_vm7, %v1978_v4, 0.0 }
 0x187   : > { %v1895_v14 = vpop.f32.mrf.mxu0 }
 0x188   : > { %v2025_v58 = vpack.c.bf16 %v1895_v14, %v1895_v14  ;;  %v1971_v53 = vmul.f32 %v1895_v14, %v1895_v14  ;;  %v1933_v1 = vsel %vm1696_vm7, %v1895_v14, 0.0 }
 0x189   : > { %v1934_v54 = vadd.f32 %v1933_v1, %v1932_v40  ;;  %v2000_v40 = vsel %vm1696_vm7, %v1977_v25, 0.0 }
 0x18a   : > { %2042 = vst.msk [vmem:[%s3668_s18 + $0x8] sm:$0xf] %vm2039_vm0, %v2025_v58  ;;  %v1988_v20 = vsel %vm1696_vm7, %v1971_v53, 0.0 }
 0x18b   : > { %v1989_v44 = vadd.f32 %v1988_v20, %v1987_v38  ;;  %v1947_v38 = vsel %vm1696_vm7, %v1912_v35, 0.0 }
 0x18f   : > { %v1897_v59 = vpop.f32.mrf.mxu0 }
 0x190   : > { %v1935_v8 = vsel %vm1696_vm7, %v1897_v59, 0.0  ;;  %v1972_v0 = vmul.f32 %v1897_v59, %v1897_v59  ;;  %v2026_v15 = vpack.c.bf16 %v1897_v59, %v1897_v59 }
 0x191   : > { %v1936_v6 = vadd.f32 %v1935_v8, %v1934_v54 }
 0x192   : > { %v1990_v52 = vsel %vm1696_vm7, %v1972_v0, 0.0  ;;  %2043 = vst.msk [vmem:[%s3668_s18 + $0xc] sm:$0xf] %vm2039_vm0, %v2026_v15 }
 0x193   : > { %v1938_v7 = vadd.f32 %v1937_v56, %v1936_v6  ;;  %v1991_v63 = vadd.f32 %v1990_v52, %v1989_v44 }
 0x195   : > { %v1993_v41 = vadd.f32 %v1992_v62, %v1991_v63  ;;  %v1940_v32 = vadd.f32 %v1939_v9, %v1938_v7 }
 0x196   : > { %v1920_v17 = vpop.f32.mrf.mxu3 }
 0x197   : > { %v2035_v11 = vpack.c.bf16 %v1920_v17, %v1920_v17  ;;  %v1995_v10 = vadd.f32 %v1994_v23, %v1993_v41  ;;  %v1981_v39 = vmul.f32 %v1920_v17, %v1920_v17  ;;  %v1953_v58 = vsel %vm1696_vm7, %v1920_v17, 0.0 }
 0x199   : > { %2052 = vst.msk [vmem:[%s3668_s18 + $0x30] sm:$0xf] %vm2039_vm0, %v2035_v11  ;;  %v2008_v54 = vsel %vm1696_vm7, %v1981_v39, 0.0 }
 0x19e   : > { %v1922_v18 = vpop.f32.mrf.mxu3 }
 0x19f   : > { %v2036_v27 = vpack.c.bf16 %v1922_v18, %v1922_v18  ;;  %v1982_v0 = vmul.f32 %v1922_v18, %v1922_v18  ;;  %v1955_v44 = vsel %vm1696_vm7, %v1922_v18, 0.0 }
 0x1a1   : > { %2053 = vst.msk [vmem:[%s3668_s18 + $0x34] sm:$0xf] %vm2039_vm0, %v2036_v27  ;;  %v2010_v52 = vsel %vm1696_vm7, %v1982_v0, 0.0 }
 0x1b0   : > { %v1905_v22 = vpop.f32.mrf.mxu1 }
 0x1b1   : > { %v2029_v55 = vpack.c.bf16 %v1905_v22, %v1905_v22  ;;  %v1975_v60 = vmul.f32 %v1905_v22, %v1905_v22  ;;  %v1941_v49 = vsel %vm1696_vm7, %v1905_v22, 0.0 }
 0x1b2   : > { %v1942_v19 = vadd.f32 %v1941_v49, %v1940_v32 }
 0x1b3   : > { %2046 = vst.msk [vmem:[%s3668_s18 + $0x18] sm:$0xf] %vm2039_vm0, %v2029_v55  ;;  %v1996_v3 = vsel %vm1696_vm7, %v1975_v60, 0.0 }
 0x1b4   : > { %v1997_v47 = vadd.f32 %v1996_v3, %v1995_v10 }
 0x1b8   : > { %v1907_v24 = vpop.f32.mrf.mxu1 }
 0x1b9   : > { %v1943_v57 = vsel %vm1696_vm7, %v1907_v24, 0.0  ;;  %v1976_v34 = vmul.f32 %v1907_v24, %v1907_v24  ;;  %v2030_v31 = vpack.c.bf16 %v1907_v24, %v1907_v24 }
 0x1ba   : > { %v1944_v29 = vadd.f32 %v1943_v57, %v1942_v19 }
 0x1bb   : > { %v1998_v12 = vsel %vm1696_vm7, %v1976_v34, 0.0  ;;  %2047 = vst.msk [vmem:[%s3668_s18 + $0x1c] sm:$0xf] %vm2039_vm0, %v2030_v31 }
 0x1bc   : > { %v1946_v28 = vadd.f32 %v1945_v45, %v1944_v29  ;;  %v1999_v30 = vadd.f32 %v1998_v12, %v1997_v47 }
 0x1be   : > { %v2001_v50 = vadd.f32 %v2000_v40, %v1999_v30  ;;  %v1915_v2 = vpop.f32.mrf.mxu2  ;;  %v1948_v46 = vadd.f32 %v1947_v38, %v1946_v28 }
 0x1bf   : > { %v2033_v51 = vpack.c.bf16 %v1915_v2, %v1915_v2  ;;  %v1979_v16 = vmul.f32 %v1915_v2, %v1915_v2  ;;  %v1949_v21 = vsel %vm1696_vm7, %v1915_v2, 0.0 }
 0x1c0   : > { %v2003_v48 = vadd.f32 %v2002_v36, %v2001_v50  ;;  %v1950_v61 = vadd.f32 %v1949_v21, %v1948_v46 }
 0x1c1   : > { %2050 = vst.msk [vmem:[%s3668_s18 + $0x28] sm:$0xf] %vm2039_vm0, %v2033_v51  ;;  %v2004_v26 = vsel %vm1696_vm7, %v1979_v16, 0.0 }
 0x1c2   : > { %v2005_v37 = vadd.f32 %v2004_v26, %v2003_v48 }
 0x1c6   : > { %v1917_v33 = vpop.f32.mrf.mxu2 }
 0x1c7   : > { %v1951_v5 = vsel %vm1696_vm7, %v1917_v33, 0.0  ;;  %v1980_v43 = vmul.f32 %v1917_v33, %v1917_v33  ;;  %v2034_v35 = vpack.c.bf16 %v1917_v33, %v1917_v33 }
 0x1c8   : > { %v1952_v14 = vadd.f32 %v1951_v5, %v1950_v61 }
 0x1c9   : > { %v2006_v53 = vsel %vm1696_vm7, %v1980_v43, 0.0  ;;  %2051 = vst.msk [vmem:[%s3668_s18 + $0x2c] sm:$0xf] %vm2039_vm0, %v2034_v35 }
 0x1ca   : > { %v1954_v1 = vadd.f32 %v1953_v58, %v1952_v14  ;;  %v2007_v20 = vadd.f32 %v2006_v53, %v2005_v37 }
 0x1cc   : > { %v2009_v59 = vadd.f32 %v2008_v54, %v2007_v20  ;;  %v1956_v56 = vadd.f32 %v1955_v44, %v1954_v1 }
 0x1ce   : > { %v2011_v62 = vadd.f32 %v2010_v52, %v2009_v59 }
 0x1d5   : > { %v1925_v13 = vpop.f32.mrf.mxu3 }
 0x1d6   : > { %v2037_v8 = vpack.c.bf16 %v1925_v13, %v1925_v13  ;;  %v1983_v15 = vmul.f32 %v1925_v13, %v1925_v13  ;;  %v1957_v6 = vsel %vm1696_vm7, %v1925_v13, 0.0 }
 0x1d7   : > { %v1958_v63 = vadd.f32 %v1957_v6, %v1956_v56 }
 0x1d8   : > { %2054 = vst.msk [vmem:[%s3668_s18 + $0x38] sm:$0xf] %vm2039_vm0, %v2037_v8  ;;  %v2012_v7 = vsel %vm1696_vm7, %v1983_v15, 0.0 }
 0x1d9   : > { %v2013_v22 = vadd.f32 %v2012_v7, %v2011_v62 }
 0x1dd   : > { %v1927_v41 = vpop.f32.mrf.mxu3 }
 0x1de   : > { %v1959_v17 = vsel %vm1696_vm7, %v1927_v41, 0.0  ;;  %v1984_v11 = vmul.f32 %v1927_v41, %v1927_v41  ;;  %v2038_v27 = vpack.c.bf16 %v1927_v41, %v1927_v41 }
 0x1df   : > { %v1960_v55 = vadd.f32 %v1959_v17, %v1958_v63 }
 0x1e0   : > { %v2014_v18 = vsel %vm1696_vm7, %v1984_v11, 0.0  ;;  %2055 = vst.msk [vmem:[%s3668_s18 + $0x3c] sm:$0xf] %vm2039_vm0, %v2038_v27  ;;  %s2653_s18 = sshra.s32 %s2090_s24, 4  ;;  %s2654_s18 = int_to_ptr.hbm [resolvable:$true] %s2653_s18 }
 0x1e1   : > { %v1961_v42 = vrot.slane %v1960_v55, 4  ;;  %v2015_v60 = vadd.f32 %v2014_v18, %v2013_v22  ;;  %s2655_s19 = scalar_lea.hbm %s2654_s18, 1  ;;  %p2660_p8 = scmp.lt.s32.totalorder %s2654_s18, %s3830_s5 }
 0x1e2   : > { %p2656_p3 = scmp.ne.s32.totalorder %s2654_s18, %s2655_s19  ;;  %p2661_p9 = scmp.lt.s32.totalorder %s2659_s16, %s2655_s19 }
 0x1e3   : > { %v1962_v9 = vadd.f32 %v1961_v42, %v1960_v55  ;;  %v2016_v49 = vrot.slane %v2015_v60, 4 }
 0x1e4   : > { %p2657_p4 = pnand %p2656_p3, %p2863_p5  ;;  %p2662_p10 = por %p2661_p9, %p2660_p8 }
 0x1e5   : > { %v1963_v32 = vrot.slane %v1962_v9, 2  ;;  %v2017_v23 = vadd.f32 %v2016_v49, %v2015_v60 }
 0x1e6   : > { %p2658_p6 = pneg %p2657_p4 }
 0x1e7   : > { %v1964_v3 = vadd.f32 %v1963_v32, %v1962_v9  ;;  %v2018_v19 = vrot.slane %v2017_v23, 2 }
 0x1e8   : > { %p2663_p11 = pnand %p2662_p10, %p2658_p6 }
 0x1e9   : > { %v1965_v10 = vrot.slane %v1964_v3, 1  ;;  %v2019_v24 = vadd.f32 %v2018_v19, %v2017_v23 }
 0x1eb   : > { %v1966_v25 = vadd.f32 %v1965_v10, %v1964_v3  ;;  %v2020_v57 = vrot.slane %v2019_v24, 1 }
 0x1ed   : > { %1968 = vst.msk [vmem:[%s384_s0] sm:$0x1] %vm1967_vm1, %v1966_v25  ;;  %v2021_v34 = vadd.f32 %v2020_v57, %v2019_v24 }
 0x1ee   : > { %2666 = shalt.err (!%p2663_p11)
}
 0x1ef   : > { %2555 = dma.vmem_to_hbm [thread:$0]  (%p2863_p5), %s2088_s3, 16, %s2090_s24, %s2067_s9   ;;  %2022 = vst.msk [vmem:[%s390_s10] sm:$0x1] %vm1967_vm1, %v2021_v34 }
 0x1f0   : > { %s2071_s13 = scalar_lea.sflag [#allocation5], %s3744_s15  ;;  %s2681_s20 = sshra.s32 %s2105_s8, 4  ;;  %s2682_s20 = int_to_ptr.hbm [resolvable:$true] %s2681_s20 }
 0x1f1   : > { %s2683_s0 = scalar_lea.hbm %s2682_s20, 1  ;;  %s2687_s7 = scalar_lea.hbm %s3831_s6, 4 }
 0x1f2   : > { %p2684_p12 = scmp.ne.s32.totalorder %s2682_s20, %s2683_s0  ;;  %p2688_p1 = scmp.lt.s32.totalorder %s2682_s20, %s3831_s6 }
 0x1f3   : > { %p2689_p2 = scmp.lt.s32.totalorder %s2687_s7, %s2683_s0 }
 0x1f4   : > { %p2685_p13 = pnand %p2684_p12, %p2863_p5 }
 0x1f5   : > { %p2690_p3 = por %p2689_p2, %p2688_p1 }
 0x1f6   : > { %p2686_p0 = pneg %p2685_p13 }
 0x1f8   : > { %p2691_p4 = pnand %p2690_p3, %p2686_p0 }
 0x1fa   : > { %2694 = shalt.err (!%p2691_p4)
}
 0x1fb   : > { %2556 = dma.vmem_to_hbm [thread:$0]  (%p2863_p5), %s2103_s14, 16, %s2105_s8, %s2071_s13  }
 0x1fc PF: > { %p2566_p6 = scmp.ge.s32.totalorder %s2765_s28, 2  ;;  %s2129_s15 = sand.u32 1, %s2737_s21  }
 0x1fd   : > { %s2130_s3 = scalar_lea.sflag [#allocation3], %s2129_s15 }
 0x1fe   : > { %p2560_p8 = pnand %p2566_p6, %p2869_p7 }
 0x200   : > { %p2561_p9 = pneg %p2560_p8 }
 0x202   : > { %2728 = dma.done.wait (%p2561_p9), %s2130_s3, 16  }
 0x203   : > { %2730 = vsyncadd (%p2561_p9), %s2130_s3, 4294967280  ;;  %s2139_s24 = scalar_lea.sflag [#allocation5], %s2129_s15 }
 0x204   : > { %2732 = dma.done.wait (%p2561_p9), %s2139_s24, 16  }
 0x205   : > { %2734 = vsyncadd (%p2561_p9), %s2139_s24, 4294967280  ;;  %s23_s28 = sadd.s32 1, %s2765_s28   ;;  %s3870_s11 = sld [smem:[#allocation8_spill]] }
 0x206   : > { %p20_p10 = scmp.ge.s32.totalorder %s23_s28, 6   ;;  %s3871_s21 = smov %s2741_s22 }
 0x207   : > { %s3872_s22 = smov %s2745_s23  ;;  %s3873_s23 = smov %s2879_s17 }
 0x208   : > { %s3874_s24 = smov %s2757_s26  ;;  %s3875_s25 = smov %s2761_s27 }
 0x209   : > { %s3876_s26 = smov %s3879_s30  ;;  %22 = sbr.rel (!%p20_p10) target bundleno = 11 (0xb), region = 108 }
 0x20b   : > { %s3877_s27 = smov %s3870_s11 }
 0x20e   :  { %2144 = vsyncpa [#allocation3], 1 }
 0x20f   :  { %2146 = vsyncpa [#allocation3 + $0x1], 1 }
 0x210   :  { %2147 = vsyncpa [#allocation5], 1 }
 0x211   :  { %2149 = vsyncpa [#allocation5 + $0x1], 1 }

</bundles_post_ra>
